<compile_context>
chip_gen: v7x
topology: tpu7x:2x2x1
jax: 0.10.0
libtpu: 0.0.40
codegen_flags: <defaults>
</compile_context>

<pallas_src>
import jax
import jax.numpy as jnp
from jax import lax
from jax.experimental import pallas as pl
from jax.experimental.pallas import tpu as pltpu
import numpy as np


def rnn_forward_kernel(x_ref,                       # (T, Bb, D)   time-major input block
                       wih0_ref, whh0_ref, b0_ref,  # (D,H) (H,H) (1,H)
                       wih1_ref, whh1_ref, b1_ref,  # (H,H) (H,H) (1,H)
                       wih2_ref, whh2_ref, b2_ref,  # (H,H) (H,H) (1,H)
                       wfc_ref, bfc_ref,            # (H,C) (1,C)
                       out_ref,                     # (Bb, C)
                       proj_a_ref, proj_b_ref):     # (T, Bb, H) ping-pong projection scratch
    T, Bb, D = x_ref.shape
    H = whh0_ref.shape[0]

    # Capped unroll factor: largest divisor of T that is <= 8.
    unroll = max(u for u in range(1, 9) if T % u == 0)

    # Layer 0: whole-sequence input projection as ONE bulk MXU matmul (bias folded in),
    # entirely off the serial recurrence chain.  Flatten is layout-free since Bb % 8 == 0.
    x_flat = x_ref[...].reshape(T * Bb, D)
    proj_a_ref[...] = (jnp.dot(x_flat, wih0_ref[...], preferred_element_type=jnp.float32)
                       + b0_ref[...]).reshape(T, Bb, H)

    def recur(proj_ref, whh_t, next_proj_ref=None, wih_next=None, b_next=None):
        # Serial chain per step: h = tanh(proj[t] + h @ W_hh^T) -- one (Bb,H)x(H,H)
        # matmul + tanh.  When a next layer exists, its per-timestep input projection is
        # produced here as well (slack-filling work, consumed only by the next recur).
        if next_proj_ref is not None:
            b_rows = jnp.broadcast_to(b_next, (Bb, H))       # hoisted out of the loop

        def step(t, h):
            h_new = jnp.tanh(proj_ref[t]
                             + jnp.dot(h, whh_t, preferred_element_type=jnp.float32))
            if next_proj_ref is not None:                     # static Python bool
                next_proj_ref[t] = (jnp.dot(h_new, wih_next,
                                            preferred_element_type=jnp.float32)
                                    + b_rows)
            return h_new

        h0 = jnp.zeros((Bb, H), jnp.float32)
        if T <= unroll:                                       # small T: full unroll
            h = h0
            for t in range(T):
                h = step(t, h)
            return h

        def block_body(i, h):                                 # `unroll` steps per trip
            base = i * unroll
            for j in range(unroll):
                h = step(base + j, h)
            return h
        return lax.fori_loop(0, T // unroll, block_body, h0)

    # TODO(synk): nn.RNN(dropout=0.4) applies dropout between layers only in train mode;
    # this kernel reproduces the eval/inference forward (no dropout).
    recur(proj_a_ref, whh0_ref[...], proj_b_ref, wih1_ref[...], b1_ref[...])   # layer 0
    recur(proj_b_ref, whh1_ref[...], proj_a_ref, wih2_ref[...], b2_ref[...])   # layer 1
    h_last = recur(proj_a_ref, whh2_ref[...])                                  # layer 2

    # Final Linear on the last timestep's hidden state.
    out_ref[...] = (jnp.dot(h_last, wfc_ref[...], preferred_element_type=jnp.float32)
                    + bfc_ref[...])


def _round_up(v, m):
    return -(-v // m) * m


def _pad2_bytes(rows, cols, itemsize=4):
    # f32 VMEM footprint of a 2-D slab after (8,128) tile padding.
    return _round_up(max(rows, 1), 8) * _round_up(max(cols, 1), 128) * itemsize


def _vmem_capacity_bytes():
    try:
        info = pltpu.get_tpu_info()
        cap = getattr(info, "vmem_capacity_bytes", None)
        if cap:
            return int(cap)
    except Exception:
        pass
    return 64 << 20   # conservative fallback: v7x per-TC VMEM (v5e/v6e have 128 MiB)


def _num_tensorcores():
    try:
        info = pltpu.get_tpu_info()
        for name in ("num_tensorcores", "tensorcore_count", "num_cores"):
            v = getattr(info, name, None)
            if v:
                return int(v)
    except Exception:
        pass
    try:
        kind = jax.devices()[0].device_kind.lower()
        if "v7" in kind or "7x" in kind:
            return 2
    except Exception:
        pass
    return 1


def _default_batch_blocks(B):
    """Split the (independent) batch across TensorCores only when it pays.

    The recurrence is a fixed-length dependent chain whose latency does not shrink with
    fewer rows (rows <= one MXU pass), so splitting small batches across the 2 TCs of a
    v7x just duplicates the chain + weight DMA; on 1-TC chips a grid is a serial loop.
    """
    if B < 512 or B % 16 != 0:
        return 1
    return 2 if _num_tensorcores() >= 2 else 1


def rnn_forward(x, layers, w_fc, b_fc, *, batch_blocks=None):
    """x: (B, T, D) batch-first input.
    layers: list of (w_ih (H,Din), w_hh (H,H), b_ih (H,), b_hh (H,)) for 3 layers.
    w_fc: (C, H), b_fc: (C,).
    """
    B, T, D = x.shape
    H = layers[0][1].shape[0]
    C = w_fc.shape[0]
    assert len(layers) == 3

    nb = batch_blocks if batch_blocks is not None else _default_batch_blocks(B)
    assert B % nb == 0 and (B // nb) % 8 == 0, (
        "per-block batch must be a multiple of 8 (sublane tiling; also keeps the "
        "(T,Bb,.)->(T*Bb,.) flatten in the kernel layout-free)")

    # ---- VMEM sizing guard (matters when shapes scale); shrink Bb, never T or H. ----
    cap = _vmem_capacity_bytes()
    w_bytes = 2 * (sum(_pad2_bytes(w_ih.shape[1], H) + _pad2_bytes(H, H) + _pad2_bytes(1, H)
                       for (w_ih, w_hh, b_ih, b_hh) in layers)
                   + _pad2_bytes(H, C) + _pad2_bytes(1, C))

    def block_bytes(bb):
        return (2 * T * _pad2_bytes(bb, H)     # two ping-pong (T,Bb,H) proj scratches
                + 2 * T * _pad2_bytes(bb, D)   # x block, double-buffered by the pipeline
                + 2 * _pad2_bytes(bb, C))      # out block, double-buffered

    budget = int(cap * 0.45)                   # headroom for pipeline internals
    while block_bytes(B // nb) + w_bytes > budget:
        nxt = nb * 2
        if B % nxt != 0 or (B // nxt) % 8 != 0:
            break
        nb = nxt
    Bb = B // nb
    need = block_bytes(Bb) + w_bytes
    vmem_limit = int(min(cap * 0.9, need + (8 << 20))) if need > (24 << 20) else None

    # Time-major layout (layout plumbing in the wrapper is free).
    x_tm = jnp.asarray(jnp.transpose(x, (1, 0, 2)), jnp.float32)           # (T, B, D)

    args = [x_tm]
    specs = [pl.BlockSpec((T, Bb, D), lambda i: (0, i, 0))]
    for (w_ih, w_hh, b_ih, b_hh) in layers:
        wih_t = jnp.asarray(w_ih.T, jnp.float32)                            # (Din, H)
        whh_t = jnp.asarray(w_hh.T, jnp.float32)                            # (H, H)
        b = jnp.asarray((b_ih + b_hh)[None, :], jnp.float32)                # (1, H)
        args += [wih_t, whh_t, b]
        specs += [pl.BlockSpec(wih_t.shape, lambda i: (0, 0)),
                  pl.BlockSpec(whh_t.shape, lambda i: (0, 0)),
                  pl.BlockSpec(b.shape, lambda i: (0, 0))]
    wfc_t = jnp.asarray(w_fc.T, jnp.float32)                                # (H, C)
    bfc = jnp.asarray(b_fc[None, :], jnp.float32)                           # (1, C)
    args += [wfc_t, bfc]
    specs += [pl.BlockSpec(wfc_t.shape, lambda i: (0, 0)),
              pl.BlockSpec(bfc.shape, lambda i: (0, 0))]

    return pl.pallas_call(
        rnn_forward_kernel,
        out_shape=jax.ShapeDtypeStruct((B, C), jnp.float32),
        grid=(nb,),
        in_specs=specs,
        out_specs=pl.BlockSpec((Bb, C), lambda i: (i, 0)),
        scratch_shapes=[pltpu.VMEM((T, Bb, H), jnp.float32),   # proj ping
                        pltpu.VMEM((T, Bb, H), jnp.float32)],  # proj pong
        compiler_params=pltpu.CompilerParams(
            dimension_semantics=("parallel",),
            vmem_limit_bytes=vmem_limit),
    )(*args)


def rnn_reference(x, layers, w_fc, b_fc):
    """Pure-JAX reference of the PyTorch forward (eval mode)."""
    B, T, _ = x.shape
    inp = x
    for (w_ih, w_hh, b_ih, b_hh) in layers:
        H = w_hh.shape[0]
        h = jnp.zeros((B, H), jnp.float32)
        outs = []
        for t in range(T):
            h = jnp.tanh(inp[:, t, :] @ w_ih.T + b_ih + h @ w_hh.T + b_hh)
            outs.append(h)
        inp = jnp.stack(outs, axis=1)
    return inp[:, -1, :] @ w_fc.T + b_fc


if __name__ == "__main__":
    # Small shapes consistent with the module: sequences of 28-dim rows, 3 RNN layers,
    # 10 classes; hidden reduced 256 -> 128 (still lane-dense) and a small batch of 8
    # (one full sublane group, no masked sublane ops per step).
    B, T, D = 8, 8, 28
    H, L, C = 128, 3, 10

    key = jax.random.PRNGKey(0)

    def uniform(k, shape, bound):
        return jax.random.uniform(k, shape, jnp.float32, -bound, bound)

    # Deterministic init mirroring PyTorch: nn.RNN params ~ U(-1/sqrt(H), 1/sqrt(H)),
    # fc weight xavier_uniform, fc bias ~ U(-1/sqrt(H), 1/sqrt(H)).
    bound_rnn = 1.0 / np.sqrt(H)
    layers = []
    for l in range(L):
        din = D if l == 0 else H
        key, k1, k2, k3, k4 = jax.random.split(key, 5)
        layers.append((uniform(k1, (H, din), bound_rnn),
                       uniform(k2, (H, H), bound_rnn),
                       uniform(k3, (H,), bound_rnn),
                       uniform(k4, (H,), bound_rnn)))

    key, kw, kb, kx = jax.random.split(key, 4)
    xavier_bound = np.sqrt(6.0 / (H + C))
    w_fc = uniform(kw, (C, H), xavier_bound)
    b_fc = uniform(kb, (C,), bound_rnn)

    x = jax.random.normal(kx, (B, T, D), jnp.float32)

    out = rnn_forward(x, layers, w_fc, b_fc)
    out = jax.block_until_ready(out)

    ref = rnn_reference(x, layers, w_fc, b_fc)
    np.testing.assert_allclose(np.asarray(out), np.asarray(ref), rtol=1e-4, atol=1e-4)

    print("KERNEL_OK")
</pallas_src>

<mosaic_0001>
module attributes {stable_mosaic.version = 11 : i64} {
  func.func @rnn_forward_kernel(%arg0: i32, %arg1: memref<8x8x28xf32, #tpu.memory_space<vmem>>, %arg2: memref<28x128xf32, #tpu.memory_space<vmem>>, %arg3: memref<128x128xf32, #tpu.memory_space<vmem>>, %arg4: memref<1x128xf32, #tpu.memory_space<vmem>>, %arg5: memref<128x128xf32, #tpu.memory_space<vmem>>, %arg6: memref<128x128xf32, #tpu.memory_space<vmem>>, %arg7: memref<1x128xf32, #tpu.memory_space<vmem>>, %arg8: memref<128x128xf32, #tpu.memory_space<vmem>>, %arg9: memref<128x128xf32, #tpu.memory_space<vmem>>, %arg10: memref<1x128xf32, #tpu.memory_space<vmem>>, %arg11: memref<128x10xf32, #tpu.memory_space<vmem>>, %arg12: memref<1x10xf32, #tpu.memory_space<vmem>>, %arg13: memref<8x10xf32, #tpu.memory_space<vmem>>, %arg14: memref<8x8x128xf32, #tpu.memory_space<vmem>>, %arg15: memref<8x8x128xf32, #tpu.memory_space<vmem>>) attributes {dimension_semantics = [#tpu.dimension_semantics<parallel>], iteration_bounds = array<i64: 1>, scalar_prefetch = 0 : i64, scratch_operands = 2 : i64, tpu.core_type = #tpu.core_type<tc>, window_params = [{transform_indices = @transform_0, window_bounds = array<i64: 8, 8, 28>}, {pipeline_mode = #tpu.pipeline_mode<synchronous>, transform_indices = @transform_1, window_bounds = array<i64: 28, 128>}, {pipeline_mode = #tpu.pipeline_mode<synchronous>, transform_indices = @transform_2, window_bounds = array<i64: 128, 128>}, {pipeline_mode = #tpu.pipeline_mode<synchronous>, transform_indices = @transform_3, window_bounds = array<i64: 1, 128>}, {pipeline_mode = #tpu.pipeline_mode<synchronous>, transform_indices = @transform_4, window_bounds = array<i64: 128, 128>}, {pipeline_mode = #tpu.pipeline_mode<synchronous>, transform_indices = @transform_5, window_bounds = array<i64: 128, 128>}, {pipeline_mode = #tpu.pipeline_mode<synchronous>, transform_indices = @transform_6, window_bounds = array<i64: 1, 128>}, {pipeline_mode = #tpu.pipeline_mode<synchronous>, transform_indices = @transform_7, window_bounds = array<i64: 128, 128>}, {pipeline_mode = #tpu.pipeline_mode<synchronous>, transform_indices = @transform_8, window_bounds = array<i64: 128, 128>}, {pipeline_mode = #tpu.pipeline_mode<synchronous>, transform_indices = @transform_9, window_bounds = array<i64: 1, 128>}, {pipeline_mode = #tpu.pipeline_mode<synchronous>, transform_indices = @transform_10, window_bounds = array<i64: 128, 10>}, {pipeline_mode = #tpu.pipeline_mode<synchronous>, transform_indices = @transform_11, window_bounds = array<i64: 1, 10>}, {transform_indices = @transform_12, window_bounds = array<i64: 8, 10>}]} {
    %c0 = arith.constant 0 : index
    %c0_0 = arith.constant 0 : index
    %c0_1 = arith.constant 0 : index
    %0 = vector.load %arg1[%c0, %c0_0, %c0_1] : memref<8x8x28xf32, #tpu.memory_space<vmem>>, vector<8x8x28xf32>
    %1 = vector.shape_cast %0 : vector<8x8x28xf32> to vector<64x28xf32>
    %c0_2 = arith.constant 0 : index
    %c0_3 = arith.constant 0 : index
    %2 = vector.load %arg2[%c0_2, %c0_3] : memref<28x128xf32, #tpu.memory_space<vmem>>, vector<28x128xf32>
    %cst = arith.constant dense<0.000000e+00> : vector<64x128xf32>
    %3 = tpu.matmul %1, %2, %cst {dimension_numbers = #tpu.dot_dimension_numbers<[1], [0], [0], [1], [0, 0, 1, 1], [], []>} : vector<64x28xf32>, vector<28x128xf32>, vector<64x128xf32> -> vector<64x128xf32>
    %c0_4 = arith.constant 0 : index
    %c0_5 = arith.constant 0 : index
    %4 = vector.load %arg4[%c0_4, %c0_5] : memref<1x128xf32, #tpu.memory_space<vmem>>, vector<1x128xf32>
    %5 = vector.broadcast %4 : vector<1x128xf32> to vector<64x128xf32>
    %6 = arith.addf %3, %5 : vector<64x128xf32>
    %7 = vector.shape_cast %6 : vector<64x128xf32> to vector<8x8x128xf32>
    %c0_6 = arith.constant 0 : index
    %c0_7 = arith.constant 0 : index
    %c0_8 = arith.constant 0 : index
    %8 = vector.load %arg14[%c0_6, %c0_7, %c0_8] : memref<8x8x128xf32, #tpu.memory_space<vmem>>, vector<8x8x128xf32>
    tpu.vector_store %arg14[%c0_6, %c0_7, %c0_8], %7 {strides = array<i32>} : memref<8x8x128xf32, #tpu.memory_space<vmem>>, vector<8x8x128xf32>,
    %c0_9 = arith.constant 0 : index
    %c0_10 = arith.constant 0 : index
    %9 = vector.load %arg3[%c0_9, %c0_10] : memref<128x128xf32, #tpu.memory_space<vmem>>, vector<128x128xf32>
    %c0_11 = arith.constant 0 : index
    %c0_12 = arith.constant 0 : index
    %10 = vector.load %arg5[%c0_11, %c0_12] : memref<128x128xf32, #tpu.memory_space<vmem>>, vector<128x128xf32>
    %c0_13 = arith.constant 0 : index
    %c0_14 = arith.constant 0 : index
    %11 = vector.load %arg7[%c0_13, %c0_14] : memref<1x128xf32, #tpu.memory_space<vmem>>, vector<1x128xf32>
    %12 = vector.shape_cast %11 : vector<1x128xf32> to vector<1x128xf32>
    %13 = vector.broadcast %12 : vector<1x128xf32> to vector<8x128xf32>
    %cst_15 = arith.constant 0.000000e+00 : f32
    %14 = vector.broadcast %cst_15 : f32 to vector<8x128xf32>
    %c0_16 = arith.constant 0 : index
    %c0_17 = arith.constant 0 : index
    %c0_18 = arith.constant 0 : index
    %15 = vector.load %arg14[%c0_16, %c0_17, %c0_18] : memref<8x8x128xf32, #tpu.memory_space<vmem>>, vector<1x8x128xf32>
    %16 = vector.shape_cast %15 : vector<1x8x128xf32> to vector<8x128xf32>
    %cst_19 = arith.constant dense<0.000000e+00> : vector<8x128xf32>
    %17 = tpu.matmul %14, %9, %cst_19 {dimension_numbers = #tpu.dot_dimension_numbers<[1], [0], [0], [1], [0, 0, 1, 1], [], []>} : vector<8x128xf32>, vector<128x128xf32>, vector<8x128xf32> -> vector<8x128xf32>
    %18 = arith.addf %16, %17 : vector<8x128xf32>
    %19 = math.tanh %18 : vector<8x128xf32>
    %cst_20 = arith.constant dense<0.000000e+00> : vector<8x128xf32>
    %20 = tpu.matmul %19, %10, %cst_20 {dimension_numbers = #tpu.dot_dimension_numbers<[1], [0], [0], [1], [0, 0, 1, 1], [], []>} : vector<8x128xf32>, vector<128x128xf32>, vector<8x128xf32> -> vector<8x128xf32>
    %21 = arith.addf %20, %13 : vector<8x128xf32>
    %c0_21 = arith.constant 0 : index
    %c0_22 = arith.constant 0 : index
    %c0_23 = arith.constant 0 : index
    %22 = vector.load %arg15[%c0_21, %c0_22, %c0_23] : memref<8x8x128xf32, #tpu.memory_space<vmem>>, vector<1x8x128xf32>
    %23 = vector.shape_cast %22 : vector<1x8x128xf32> to vector<8x128xf32>
    %24 = vector.shape_cast %21 : vector<8x128xf32> to vector<1x8x128xf32>
    tpu.vector_store %arg15[%c0_21, %c0_22, %c0_23], %24 {strides = array<i32>} : memref<8x8x128xf32, #tpu.memory_space<vmem>>, vector<1x8x128xf32>,
    %c1 = arith.constant 1 : index
    %c0_24 = arith.constant 0 : index
    %c0_25 = arith.constant 0 : index
    %25 = vector.load %arg14[%c1, %c0_24, %c0_25] : memref<8x8x128xf32, #tpu.memory_space<vmem>>, vector<1x8x128xf32>
    %26 = vector.shape_cast %25 : vector<1x8x128xf32> to vector<8x128xf32>
    %cst_26 = arith.constant dense<0.000000e+00> : vector<8x128xf32>
    %27 = tpu.matmul %19, %9, %cst_26 {dimension_numbers = #tpu.dot_dimension_numbers<[1], [0], [0], [1], [0, 0, 1, 1], [], []>} : vector<8x128xf32>, vector<128x128xf32>, vector<8x128xf32> -> vector<8x128xf32>
    %28 = arith.addf %26, %27 : vector<8x128xf32>
    %29 = math.tanh %28 : vector<8x128xf32>
    %cst_27 = arith.constant dense<0.000000e+00> : vector<8x128xf32>
    %30 = tpu.matmul %29, %10, %cst_27 {dimension_numbers = #tpu.dot_dimension_numbers<[1], [0], [0], [1], [0, 0, 1, 1], [], []>} : vector<8x128xf32>, vector<128x128xf32>, vector<8x128xf32> -> vector<8x128xf32>
    %31 = arith.addf %30, %13 : vector<8x128xf32>
    %c1_28 = arith.constant 1 : index
    %c0_29 = arith.constant 0 : index
    %c0_30 = arith.constant 0 : index
    %32 = vector.load %arg15[%c1_28, %c0_29, %c0_30] : memref<8x8x128xf32, #tpu.memory_space<vmem>>, vector<1x8x128xf32>
    %33 = vector.shape_cast %32 : vector<1x8x128xf32> to vector<8x128xf32>
    %34 = vector.shape_cast %31 : vector<8x128xf32> to vector<1x8x128xf32>
    tpu.vector_store %arg15[%c1_28, %c0_29, %c0_30], %34 {strides = array<i32>} : memref<8x8x128xf32, #tpu.memory_space<vmem>>, vector<1x8x128xf32>,
    %c2 = arith.constant 2 : index
    %c0_31 = arith.constant 0 : index
    %c0_32 = arith.constant 0 : index
    %35 = vector.load %arg14[%c2, %c0_31, %c0_32] : memref<8x8x128xf32, #tpu.memory_space<vmem>>, vector<1x8x128xf32>
    %36 = vector.shape_cast %35 : vector<1x8x128xf32> to vector<8x128xf32>
    %cst_33 = arith.constant dense<0.000000e+00> : vector<8x128xf32>
    %37 = tpu.matmul %29, %9, %cst_33 {dimension_numbers = #tpu.dot_dimension_numbers<[1], [0], [0], [1], [0, 0, 1, 1], [], []>} : vector<8x128xf32>, vector<128x128xf32>, vector<8x128xf32> -> vector<8x128xf32>
    %38 = arith.addf %36, %37 : vector<8x128xf32>
    %39 = math.tanh %38 : vector<8x128xf32>
    %cst_34 = arith.constant dense<0.000000e+00> : vector<8x128xf32>
    %40 = tpu.matmul %39, %10, %cst_34 {dimension_numbers = #tpu.dot_dimension_numbers<[1], [0], [0], [1], [0, 0, 1, 1], [], []>} : vector<8x128xf32>, vector<128x128xf32>, vector<8x128xf32> -> vector<8x128xf32>
    %41 = arith.addf %40, %13 : vector<8x128xf32>
    %c2_35 = arith.constant 2 : index
    %c0_36 = arith.constant 0 : index
    %c0_37 = arith.constant 0 : index
    %42 = vector.load %arg15[%c2_35, %c0_36, %c0_37] : memref<8x8x128xf32, #tpu.memory_space<vmem>>, vector<1x8x128xf32>
    %43 = vector.shape_cast %42 : vector<1x8x128xf32> to vector<8x128xf32>
    %44 = vector.shape_cast %41 : vector<8x128xf32> to vector<1x8x128xf32>
    tpu.vector_store %arg15[%c2_35, %c0_36, %c0_37], %44 {strides = array<i32>} : memref<8x8x128xf32, #tpu.memory_space<vmem>>, vector<1x8x128xf32>,
    %c3 = arith.constant 3 : index
    %c0_38 = arith.constant 0 : index
    %c0_39 = arith.constant 0 : index
    %45 = vector.load %arg14[%c3, %c0_38, %c0_39] : memref<8x8x128xf32, #tpu.memory_space<vmem>>, vector<1x8x128xf32>
    %46 = vector.shape_cast %45 : vector<1x8x128xf32> to vector<8x128xf32>
    %cst_40 = arith.constant dense<0.000000e+00> : vector<8x128xf32>
    %47 = tpu.matmul %39, %9, %cst_40 {dimension_numbers = #tpu.dot_dimension_numbers<[1], [0], [0], [1], [0, 0, 1, 1], [], []>} : vector<8x128xf32>, vector<128x128xf32>, vector<8x128xf32> -> vector<8x128xf32>
    %48 = arith.addf %46, %47 : vector<8x128xf32>
    %49 = math.tanh %48 : vector<8x128xf32>
    %cst_41 = arith.constant dense<0.000000e+00> : vector<8x128xf32>
    %50 = tpu.matmul %49, %10, %cst_41 {dimension_numbers = #tpu.dot_dimension_numbers<[1], [0], [0], [1], [0, 0, 1, 1], [], []>} : vector<8x128xf32>, vector<128x128xf32>, vector<8x128xf32> -> vector<8x128xf32>
    %51 = arith.addf %50, %13 : vector<8x128xf32>
    %c3_42 = arith.constant 3 : index
    %c0_43 = arith.constant 0 : index
    %c0_44 = arith.constant 0 : index
    %52 = vector.load %arg15[%c3_42, %c0_43, %c0_44] : memref<8x8x128xf32, #tpu.memory_space<vmem>>, vector<1x8x128xf32>
    %53 = vector.shape_cast %52 : vector<1x8x128xf32> to vector<8x128xf32>
    %54 = vector.shape_cast %51 : vector<8x128xf32> to vector<1x8x128xf32>
    tpu.vector_store %arg15[%c3_42, %c0_43, %c0_44], %54 {strides = array<i32>} : memref<8x8x128xf32, #tpu.memory_space<vmem>>, vector<1x8x128xf32>,
    %c4 = arith.constant 4 : index
    %c0_45 = arith.constant 0 : index
    %c0_46 = arith.constant 0 : index
    %55 = vector.load %arg14[%c4, %c0_45, %c0_46] : memref<8x8x128xf32, #tpu.memory_space<vmem>>, vector<1x8x128xf32>
    %56 = vector.shape_cast %55 : vector<1x8x128xf32> to vector<8x128xf32>
    %cst_47 = arith.constant dense<0.000000e+00> : vector<8x128xf32>
    %57 = tpu.matmul %49, %9, %cst_47 {dimension_numbers = #tpu.dot_dimension_numbers<[1], [0], [0], [1], [0, 0, 1, 1], [], []>} : vector<8x128xf32>, vector<128x128xf32>, vector<8x128xf32> -> vector<8x128xf32>
    %58 = arith.addf %56, %57 : vector<8x128xf32>
    %59 = math.tanh %58 : vector<8x128xf32>
    %cst_48 = arith.constant dense<0.000000e+00> : vector<8x128xf32>
    %60 = tpu.matmul %59, %10, %cst_48 {dimension_numbers = #tpu.dot_dimension_numbers<[1], [0], [0], [1], [0, 0, 1, 1], [], []>} : vector<8x128xf32>, vector<128x128xf32>, vector<8x128xf32> -> vector<8x128xf32>
    %61 = arith.addf %60, %13 : vector<8x128xf32>
    %c4_49 = arith.constant 4 : index
    %c0_50 = arith.constant 0 : index
    %c0_51 = arith.constant 0 : index
    %62 = vector.load %arg15[%c4_49, %c0_50, %c0_51] : memref<8x8x128xf32, #tpu.memory_space<vmem>>, vector<1x8x128xf32>
    %63 = vector.shape_cast %62 : vector<1x8x128xf32> to vector<8x128xf32>
    %64 = vector.shape_cast %61 : vector<8x128xf32> to vector<1x8x128xf32>
    tpu.vector_store %arg15[%c4_49, %c0_50, %c0_51], %64 {strides = array<i32>} : memref<8x8x128xf32, #tpu.memory_space<vmem>>, vector<1x8x128xf32>,
    %c5 = arith.constant 5 : index
    %c0_52 = arith.constant 0 : index
    %c0_53 = arith.constant 0 : index
    %65 = vector.load %arg14[%c5, %c0_52, %c0_53] : memref<8x8x128xf32, #tpu.memory_space<vmem>>, vector<1x8x128xf32>
    %66 = vector.shape_cast %65 : vector<1x8x128xf32> to vector<8x128xf32>
    %cst_54 = arith.constant dense<0.000000e+00> : vector<8x128xf32>
    %67 = tpu.matmul %59, %9, %cst_54 {dimension_numbers = #tpu.dot_dimension_numbers<[1], [0], [0], [1], [0, 0, 1, 1], [], []>} : vector<8x128xf32>, vector<128x128xf32>, vector<8x128xf32> -> vector<8x128xf32>
    %68 = arith.addf %66, %67 : vector<8x128xf32>
    %69 = math.tanh %68 : vector<8x128xf32>
    %cst_55 = arith.constant dense<0.000000e+00> : vector<8x128xf32>
    %70 = tpu.matmul %69, %10, %cst_55 {dimension_numbers = #tpu.dot_dimension_numbers<[1], [0], [0], [1], [0, 0, 1, 1], [], []>} : vector<8x128xf32>, vector<128x128xf32>, vector<8x128xf32> -> vector<8x128xf32>
    %71 = arith.addf %70, %13 : vector<8x128xf32>
    %c5_56 = arith.constant 5 : index
    %c0_57 = arith.constant 0 : index
    %c0_58 = arith.constant 0 : index
    %72 = vector.load %arg15[%c5_56, %c0_57, %c0_58] : memref<8x8x128xf32, #tpu.memory_space<vmem>>, vector<1x8x128xf32>
    %73 = vector.shape_cast %72 : vector<1x8x128xf32> to vector<8x128xf32>
    %74 = vector.shape_cast %71 : vector<8x128xf32> to vector<1x8x128xf32>
    tpu.vector_store %arg15[%c5_56, %c0_57, %c0_58], %74 {strides = array<i32>} : memref<8x8x128xf32, #tpu.memory_space<vmem>>, vector<1x8x128xf32>,
    %c6 = arith.constant 6 : index
    %c0_59 = arith.constant 0 : index
    %c0_60 = arith.constant 0 : index
    %75 = vector.load %arg14[%c6, %c0_59, %c0_60] : memref<8x8x128xf32, #tpu.memory_space<vmem>>, vector<1x8x128xf32>
    %76 = vector.shape_cast %75 : vector<1x8x128xf32> to vector<8x128xf32>
    %cst_61 = arith.constant dense<0.000000e+00> : vector<8x128xf32>
    %77 = tpu.matmul %69, %9, %cst_61 {dimension_numbers = #tpu.dot_dimension_numbers<[1], [0], [0], [1], [0, 0, 1, 1], [], []>} : vector<8x128xf32>, vector<128x128xf32>, vector<8x128xf32> -> vector<8x128xf32>
    %78 = arith.addf %76, %77 : vector<8x128xf32>
    %79 = math.tanh %78 : vector<8x128xf32>
    %cst_62 = arith.constant dense<0.000000e+00> : vector<8x128xf32>
    %80 = tpu.matmul %79, %10, %cst_62 {dimension_numbers = #tpu.dot_dimension_numbers<[1], [0], [0], [1], [0, 0, 1, 1], [], []>} : vector<8x128xf32>, vector<128x128xf32>, vector<8x128xf32> -> vector<8x128xf32>
    %81 = arith.addf %80, %13 : vector<8x128xf32>
    %c6_63 = arith.constant 6 : index
    %c0_64 = arith.constant 0 : index
    %c0_65 = arith.constant 0 : index
    %82 = vector.load %arg15[%c6_63, %c0_64, %c0_65] : memref<8x8x128xf32, #tpu.memory_space<vmem>>, vector<1x8x128xf32>
    %83 = vector.shape_cast %82 : vector<1x8x128xf32> to vector<8x128xf32>
    %84 = vector.shape_cast %81 : vector<8x128xf32> to vector<1x8x128xf32>
    tpu.vector_store %arg15[%c6_63, %c0_64, %c0_65], %84 {strides = array<i32>} : memref<8x8x128xf32, #tpu.memory_space<vmem>>, vector<1x8x128xf32>,
    %c7 = arith.constant 7 : index
    %c0_66 = arith.constant 0 : index
    %c0_67 = arith.constant 0 : index
    %85 = vector.load %arg14[%c7, %c0_66, %c0_67] : memref<8x8x128xf32, #tpu.memory_space<vmem>>, vector<1x8x128xf32>
    %86 = vector.shape_cast %85 : vector<1x8x128xf32> to vector<8x128xf32>
    %cst_68 = arith.constant dense<0.000000e+00> : vector<8x128xf32>
    %87 = tpu.matmul %79, %9, %cst_68 {dimension_numbers = #tpu.dot_dimension_numbers<[1], [0], [0], [1], [0, 0, 1, 1], [], []>} : vector<8x128xf32>, vector<128x128xf32>, vector<8x128xf32> -> vector<8x128xf32>
    %88 = arith.addf %86, %87 : vector<8x128xf32>
    %89 = math.tanh %88 : vector<8x128xf32>
    %cst_69 = arith.constant dense<0.000000e+00> : vector<8x128xf32>
    %90 = tpu.matmul %89, %10, %cst_69 {dimension_numbers = #tpu.dot_dimension_numbers<[1], [0], [0], [1], [0, 0, 1, 1], [], []>} : vector<8x128xf32>, vector<128x128xf32>, vector<8x128xf32> -> vector<8x128xf32>
    %91 = arith.addf %90, %13 : vector<8x128xf32>
    %c7_70 = arith.constant 7 : index
    %c0_71 = arith.constant 0 : index
    %c0_72 = arith.constant 0 : index
    %92 = vector.load %arg15[%c7_70, %c0_71, %c0_72] : memref<8x8x128xf32, #tpu.memory_space<vmem>>, vector<1x8x128xf32>
    %93 = vector.shape_cast %92 : vector<1x8x128xf32> to vector<8x128xf32>
    %94 = vector.shape_cast %91 : vector<8x128xf32> to vector<1x8x128xf32>
    tpu.vector_store %arg15[%c7_70, %c0_71, %c0_72], %94 {strides = array<i32>} : memref<8x8x128xf32, #tpu.memory_space<vmem>>, vector<1x8x128xf32>,
    %c0_73 = arith.constant 0 : index
    %c0_74 = arith.constant 0 : index
    %95 = vector.load %arg6[%c0_73, %c0_74] : memref<128x128xf32, #tpu.memory_space<vmem>>, vector<128x128xf32>
    %c0_75 = arith.constant 0 : index
    %c0_76 = arith.constant 0 : index
    %96 = vector.load %arg8[%c0_75, %c0_76] : memref<128x128xf32, #tpu.memory_space<vmem>>, vector<128x128xf32>
    %c0_77 = arith.constant 0 : index
    %c0_78 = arith.constant 0 : index
    %97 = vector.load %arg10[%c0_77, %c0_78] : memref<1x128xf32, #tpu.memory_space<vmem>>, vector<1x128xf32>
    %98 = vector.shape_cast %97 : vector<1x128xf32> to vector<1x128xf32>
    %99 = vector.broadcast %98 : vector<1x128xf32> to vector<8x128xf32>
    %cst_79 = arith.constant 0.000000e+00 : f32
    %100 = vector.broadcast %cst_79 : f32 to vector<8x128xf32>
    %c0_80 = arith.constant 0 : index
    %c0_81 = arith.constant 0 : index
    %c0_82 = arith.constant 0 : index
    %101 = vector.load %arg15[%c0_80, %c0_81, %c0_82] : memref<8x8x128xf32, #tpu.memory_space<vmem>>, vector<1x8x128xf32>
    %102 = vector.shape_cast %101 : vector<1x8x128xf32> to vector<8x128xf32>
    %cst_83 = arith.constant dense<0.000000e+00> : vector<8x128xf32>
    %103 = tpu.matmul %100, %95, %cst_83 {dimension_numbers = #tpu.dot_dimension_numbers<[1], [0], [0], [1], [0, 0, 1, 1], [], []>} : vector<8x128xf32>, vector<128x128xf32>, vector<8x128xf32> -> vector<8x128xf32>
    %104 = arith.addf %102, %103 : vector<8x128xf32>
    %105 = math.tanh %104 : vector<8x128xf32>
    %cst_84 = arith.constant dense<0.000000e+00> : vector<8x128xf32>
    %106 = tpu.matmul %105, %96, %cst_84 {dimension_numbers = #tpu.dot_dimension_numbers<[1], [0], [0], [1], [0, 0, 1, 1], [], []>} : vector<8x128xf32>, vector<128x128xf32>, vector<8x128xf32> -> vector<8x128xf32>
    %107 = arith.addf %106, %99 : vector<8x128xf32>
    %c0_85 = arith.constant 0 : index
    %c0_86 = arith.constant 0 : index
    %c0_87 = arith.constant 0 : index
    %108 = vector.load %arg14[%c0_85, %c0_86, %c0_87] : memref<8x8x128xf32, #tpu.memory_space<vmem>>, vector<1x8x128xf32>
    %109 = vector.shape_cast %108 : vector<1x8x128xf32> to vector<8x128xf32>
    %110 = vector.shape_cast %107 : vector<8x128xf32> to vector<1x8x128xf32>
    tpu.vector_store %arg14[%c0_85, %c0_86, %c0_87], %110 {strides = array<i32>} : memref<8x8x128xf32, #tpu.memory_space<vmem>>, vector<1x8x128xf32>,
    %c1_88 = arith.constant 1 : index
    %c0_89 = arith.constant 0 : index
    %c0_90 = arith.constant 0 : index
    %111 = vector.load %arg15[%c1_88, %c0_89, %c0_90] : memref<8x8x128xf32, #tpu.memory_space<vmem>>, vector<1x8x128xf32>
    %112 = vector.shape_cast %111 : vector<1x8x128xf32> to vector<8x128xf32>
    %cst_91 = arith.constant dense<0.000000e+00> : vector<8x128xf32>
    %113 = tpu.matmul %105, %95, %cst_91 {dimension_numbers = #tpu.dot_dimension_numbers<[1], [0], [0], [1], [0, 0, 1, 1], [], []>} : vector<8x128xf32>, vector<128x128xf32>, vector<8x128xf32> -> vector<8x128xf32>
    %114 = arith.addf %112, %113 : vector<8x128xf32>
    %115 = math.tanh %114 : vector<8x128xf32>
    %cst_92 = arith.constant dense<0.000000e+00> : vector<8x128xf32>
    %116 = tpu.matmul %115, %96, %cst_92 {dimension_numbers = #tpu.dot_dimension_numbers<[1], [0], [0], [1], [0, 0, 1, 1], [], []>} : vector<8x128xf32>, vector<128x128xf32>, vector<8x128xf32> -> vector<8x128xf32>
    %117 = arith.addf %116, %99 : vector<8x128xf32>
    %c1_93 = arith.constant 1 : index
    %c0_94 = arith.constant 0 : index
    %c0_95 = arith.constant 0 : index
    %118 = vector.load %arg14[%c1_93, %c0_94, %c0_95] : memref<8x8x128xf32, #tpu.memory_space<vmem>>, vector<1x8x128xf32>
    %119 = vector.shape_cast %118 : vector<1x8x128xf32> to vector<8x128xf32>
    %120 = vector.shape_cast %117 : vector<8x128xf32> to vector<1x8x128xf32>
    tpu.vector_store %arg14[%c1_93, %c0_94, %c0_95], %120 {strides = array<i32>} : memref<8x8x128xf32, #tpu.memory_space<vmem>>, vector<1x8x128xf32>,
    %c2_96 = arith.constant 2 : index
    %c0_97 = arith.constant 0 : index
    %c0_98 = arith.constant 0 : index
    %121 = vector.load %arg15[%c2_96, %c0_97, %c0_98] : memref<8x8x128xf32, #tpu.memory_space<vmem>>, vector<1x8x128xf32>
    %122 = vector.shape_cast %121 : vector<1x8x128xf32> to vector<8x128xf32>
    %cst_99 = arith.constant dense<0.000000e+00> : vector<8x128xf32>
    %123 = tpu.matmul %115, %95, %cst_99 {dimension_numbers = #tpu.dot_dimension_numbers<[1], [0], [0], [1], [0, 0, 1, 1], [], []>} : vector<8x128xf32>, vector<128x128xf32>, vector<8x128xf32> -> vector<8x128xf32>
    %124 = arith.addf %122, %123 : vector<8x128xf32>
    %125 = math.tanh %124 : vector<8x128xf32>
    %cst_100 = arith.constant dense<0.000000e+00> : vector<8x128xf32>
    %126 = tpu.matmul %125, %96, %cst_100 {dimension_numbers = #tpu.dot_dimension_numbers<[1], [0], [0], [1], [0, 0, 1, 1], [], []>} : vector<8x128xf32>, vector<128x128xf32>, vector<8x128xf32> -> vector<8x128xf32>
    %127 = arith.addf %126, %99 : vector<8x128xf32>
    %c2_101 = arith.constant 2 : index
    %c0_102 = arith.constant 0 : index
    %c0_103 = arith.constant 0 : index
    %128 = vector.load %arg14[%c2_101, %c0_102, %c0_103] : memref<8x8x128xf32, #tpu.memory_space<vmem>>, vector<1x8x128xf32>
    %129 = vector.shape_cast %128 : vector<1x8x128xf32> to vector<8x128xf32>
    %130 = vector.shape_cast %127 : vector<8x128xf32> to vector<1x8x128xf32>
    tpu.vector_store %arg14[%c2_101, %c0_102, %c0_103], %130 {strides = array<i32>} : memref<8x8x128xf32, #tpu.memory_space<vmem>>, vector<1x8x128xf32>,
    %c3_104 = arith.constant 3 : index
    %c0_105 = arith.constant 0 : index
    %c0_106 = arith.constant 0 : index
    %131 = vector.load %arg15[%c3_104, %c0_105, %c0_106] : memref<8x8x128xf32, #tpu.memory_space<vmem>>, vector<1x8x128xf32>
    %132 = vector.shape_cast %131 : vector<1x8x128xf32> to vector<8x128xf32>
    %cst_107 = arith.constant dense<0.000000e+00> : vector<8x128xf32>
    %133 = tpu.matmul %125, %95, %cst_107 {dimension_numbers = #tpu.dot_dimension_numbers<[1], [0], [0], [1], [0, 0, 1, 1], [], []>} : vector<8x128xf32>, vector<128x128xf32>, vector<8x128xf32> -> vector<8x128xf32>
    %134 = arith.addf %132, %133 : vector<8x128xf32>
    %135 = math.tanh %134 : vector<8x128xf32>
    %cst_108 = arith.constant dense<0.000000e+00> : vector<8x128xf32>
    %136 = tpu.matmul %135, %96, %cst_108 {dimension_numbers = #tpu.dot_dimension_numbers<[1], [0], [0], [1], [0, 0, 1, 1], [], []>} : vector<8x128xf32>, vector<128x128xf32>, vector<8x128xf32> -> vector<8x128xf32>
    %137 = arith.addf %136, %99 : vector<8x128xf32>
    %c3_109 = arith.constant 3 : index
    %c0_110 = arith.constant 0 : index
    %c0_111 = arith.constant 0 : index
    %138 = vector.load %arg14[%c3_109, %c0_110, %c0_111] : memref<8x8x128xf32, #tpu.memory_space<vmem>>, vector<1x8x128xf32>
    %139 = vector.shape_cast %138 : vector<1x8x128xf32> to vector<8x128xf32>
    %140 = vector.shape_cast %137 : vector<8x128xf32> to vector<1x8x128xf32>
    tpu.vector_store %arg14[%c3_109, %c0_110, %c0_111], %140 {strides = array<i32>} : memref<8x8x128xf32, #tpu.memory_space<vmem>>, vector<1x8x128xf32>,
    %c4_112 = arith.constant 4 : index
    %c0_113 = arith.constant 0 : index
    %c0_114 = arith.constant 0 : index
    %141 = vector.load %arg15[%c4_112, %c0_113, %c0_114] : memref<8x8x128xf32, #tpu.memory_space<vmem>>, vector<1x8x128xf32>
    %142 = vector.shape_cast %141 : vector<1x8x128xf32> to vector<8x128xf32>
    %cst_115 = arith.constant dense<0.000000e+00> : vector<8x128xf32>
    %143 = tpu.matmul %135, %95, %cst_115 {dimension_numbers = #tpu.dot_dimension_numbers<[1], [0], [0], [1], [0, 0, 1, 1], [], []>} : vector<8x128xf32>, vector<128x128xf32>, vector<8x128xf32> -> vector<8x128xf32>
    %144 = arith.addf %142, %143 : vector<8x128xf32>
    %145 = math.tanh %144 : vector<8x128xf32>
    %cst_116 = arith.constant dense<0.000000e+00> : vector<8x128xf32>
    %146 = tpu.matmul %145, %96, %cst_116 {dimension_numbers = #tpu.dot_dimension_numbers<[1], [0], [0], [1], [0, 0, 1, 1], [], []>} : vector<8x128xf32>, vector<128x128xf32>, vector<8x128xf32> -> vector<8x128xf32>
    %147 = arith.addf %146, %99 : vector<8x128xf32>
    %c4_117 = arith.constant 4 : index
    %c0_118 = arith.constant 0 : index
    %c0_119 = arith.constant 0 : index
    %148 = vector.load %arg14[%c4_117, %c0_118, %c0_119] : memref<8x8x128xf32, #tpu.memory_space<vmem>>, vector<1x8x128xf32>
    %149 = vector.shape_cast %148 : vector<1x8x128xf32> to vector<8x128xf32>
    %150 = vector.shape_cast %147 : vector<8x128xf32> to vector<1x8x128xf32>
    tpu.vector_store %arg14[%c4_117, %c0_118, %c0_119], %150 {strides = array<i32>} : memref<8x8x128xf32, #tpu.memory_space<vmem>>, vector<1x8x128xf32>,
    %c5_120 = arith.constant 5 : index
    %c0_121 = arith.constant 0 : index
    %c0_122 = arith.constant 0 : index
    %151 = vector.load %arg15[%c5_120, %c0_121, %c0_122] : memref<8x8x128xf32, #tpu.memory_space<vmem>>, vector<1x8x128xf32>
    %152 = vector.shape_cast %151 : vector<1x8x128xf32> to vector<8x128xf32>
    %cst_123 = arith.constant dense<0.000000e+00> : vector<8x128xf32>
    %153 = tpu.matmul %145, %95, %cst_123 {dimension_numbers = #tpu.dot_dimension_numbers<[1], [0], [0], [1], [0, 0, 1, 1], [], []>} : vector<8x128xf32>, vector<128x128xf32>, vector<8x128xf32> -> vector<8x128xf32>
    %154 = arith.addf %152, %153 : vector<8x128xf32>
    %155 = math.tanh %154 : vector<8x128xf32>
    %cst_124 = arith.constant dense<0.000000e+00> : vector<8x128xf32>
    %156 = tpu.matmul %155, %96, %cst_124 {dimension_numbers = #tpu.dot_dimension_numbers<[1], [0], [0], [1], [0, 0, 1, 1], [], []>} : vector<8x128xf32>, vector<128x128xf32>, vector<8x128xf32> -> vector<8x128xf32>
    %157 = arith.addf %156, %99 : vector<8x128xf32>
    %c5_125 = arith.constant 5 : index
    %c0_126 = arith.constant 0 : index
    %c0_127 = arith.constant 0 : index
    %158 = vector.load %arg14[%c5_125, %c0_126, %c0_127] : memref<8x8x128xf32, #tpu.memory_space<vmem>>, vector<1x8x128xf32>
    %159 = vector.shape_cast %158 : vector<1x8x128xf32> to vector<8x128xf32>
    %160 = vector.shape_cast %157 : vector<8x128xf32> to vector<1x8x128xf32>
    tpu.vector_store %arg14[%c5_125, %c0_126, %c0_127], %160 {strides = array<i32>} : memref<8x8x128xf32, #tpu.memory_space<vmem>>, vector<1x8x128xf32>,
    %c6_128 = arith.constant 6 : index
    %c0_129 = arith.constant 0 : index
    %c0_130 = arith.constant 0 : index
    %161 = vector.load %arg15[%c6_128, %c0_129, %c0_130] : memref<8x8x128xf32, #tpu.memory_space<vmem>>, vector<1x8x128xf32>
    %162 = vector.shape_cast %161 : vector<1x8x128xf32> to vector<8x128xf32>
    %cst_131 = arith.constant dense<0.000000e+00> : vector<8x128xf32>
    %163 = tpu.matmul %155, %95, %cst_131 {dimension_numbers = #tpu.dot_dimension_numbers<[1], [0], [0], [1], [0, 0, 1, 1], [], []>} : vector<8x128xf32>, vector<128x128xf32>, vector<8x128xf32> -> vector<8x128xf32>
    %164 = arith.addf %162, %163 : vector<8x128xf32>
    %165 = math.tanh %164 : vector<8x128xf32>
    %cst_132 = arith.constant dense<0.000000e+00> : vector<8x128xf32>
    %166 = tpu.matmul %165, %96, %cst_132 {dimension_numbers = #tpu.dot_dimension_numbers<[1], [0], [0], [1], [0, 0, 1, 1], [], []>} : vector<8x128xf32>, vector<128x128xf32>, vector<8x128xf32> -> vector<8x128xf32>
    %167 = arith.addf %166, %99 : vector<8x128xf32>
    %c6_133 = arith.constant 6 : index
    %c0_134 = arith.constant 0 : index
    %c0_135 = arith.constant 0 : index
    %168 = vector.load %arg14[%c6_133, %c0_134, %c0_135] : memref<8x8x128xf32, #tpu.memory_space<vmem>>, vector<1x8x128xf32>
    %169 = vector.shape_cast %168 : vector<1x8x128xf32> to vector<8x128xf32>
    %170 = vector.shape_cast %167 : vector<8x128xf32> to vector<1x8x128xf32>
    tpu.vector_store %arg14[%c6_133, %c0_134, %c0_135], %170 {strides = array<i32>} : memref<8x8x128xf32, #tpu.memory_space<vmem>>, vector<1x8x128xf32>,
    %c7_136 = arith.constant 7 : index
    %c0_137 = arith.constant 0 : index
    %c0_138 = arith.constant 0 : index
    %171 = vector.load %arg15[%c7_136, %c0_137, %c0_138] : memref<8x8x128xf32, #tpu.memory_space<vmem>>, vector<1x8x128xf32>
    %172 = vector.shape_cast %171 : vector<1x8x128xf32> to vector<8x128xf32>
    %cst_139 = arith.constant dense<0.000000e+00> : vector<8x128xf32>
    %173 = tpu.matmul %165, %95, %cst_139 {dimension_numbers = #tpu.dot_dimension_numbers<[1], [0], [0], [1], [0, 0, 1, 1], [], []>} : vector<8x128xf32>, vector<128x128xf32>, vector<8x128xf32> -> vector<8x128xf32>
    %174 = arith.addf %172, %173 : vector<8x128xf32>
    %175 = math.tanh %174 : vector<8x128xf32>
    %cst_140 = arith.constant dense<0.000000e+00> : vector<8x128xf32>
    %176 = tpu.matmul %175, %96, %cst_140 {dimension_numbers = #tpu.dot_dimension_numbers<[1], [0], [0], [1], [0, 0, 1, 1], [], []>} : vector<8x128xf32>, vector<128x128xf32>, vector<8x128xf32> -> vector<8x128xf32>
    %177 = arith.addf %176, %99 : vector<8x128xf32>
    %c7_141 = arith.constant 7 : index
    %c0_142 = arith.constant 0 : index
    %c0_143 = arith.constant 0 : index
    %178 = vector.load %arg14[%c7_141, %c0_142, %c0_143] : memref<8x8x128xf32, #tpu.memory_space<vmem>>, vector<1x8x128xf32>
    %179 = vector.shape_cast %178 : vector<1x8x128xf32> to vector<8x128xf32>
    %180 = vector.shape_cast %177 : vector<8x128xf32> to vector<1x8x128xf32>
    tpu.vector_store %arg14[%c7_141, %c0_142, %c0_143], %180 {strides = array<i32>} : memref<8x8x128xf32, #tpu.memory_space<vmem>>, vector<1x8x128xf32>,
    %c0_144 = arith.constant 0 : index
    %c0_145 = arith.constant 0 : index
    %181 = vector.load %arg9[%c0_144, %c0_145] : memref<128x128xf32, #tpu.memory_space<vmem>>, vector<128x128xf32>
    %cst_146 = arith.constant 0.000000e+00 : f32
    %182 = vector.broadcast %cst_146 : f32 to vector<8x128xf32>
    %c0_147 = arith.constant 0 : index
    %c0_148 = arith.constant 0 : index
    %c0_149 = arith.constant 0 : index
    %183 = vector.load %arg14[%c0_147, %c0_148, %c0_149] : memref<8x8x128xf32, #tpu.memory_space<vmem>>, vector<1x8x128xf32>
    %184 = vector.shape_cast %183 : vector<1x8x128xf32> to vector<8x128xf32>
    %cst_150 = arith.constant dense<0.000000e+00> : vector<8x128xf32>
    %185 = tpu.matmul %182, %181, %cst_150 {dimension_numbers = #tpu.dot_dimension_numbers<[1], [0], [0], [1], [0, 0, 1, 1], [], []>} : vector<8x128xf32>, vector<128x128xf32>, vector<8x128xf32> -> vector<8x128xf32>
    %186 = arith.addf %184, %185 : vector<8x128xf32>
    %187 = math.tanh %186 : vector<8x128xf32>
    %c1_151 = arith.constant 1 : index
    %c0_152 = arith.constant 0 : index
    %c0_153 = arith.constant 0 : index
    %188 = vector.load %arg14[%c1_151, %c0_152, %c0_153] : memref<8x8x128xf32, #tpu.memory_space<vmem>>, vector<1x8x128xf32>
    %189 = vector.shape_cast %188 : vector<1x8x128xf32> to vector<8x128xf32>
    %cst_154 = arith.constant dense<0.000000e+00> : vector<8x128xf32>
    %190 = tpu.matmul %187, %181, %cst_154 {dimension_numbers = #tpu.dot_dimension_numbers<[1], [0], [0], [1], [0, 0, 1, 1], [], []>} : vector<8x128xf32>, vector<128x128xf32>, vector<8x128xf32> -> vector<8x128xf32>
    %191 = arith.addf %189, %190 : vector<8x128xf32>
    %192 = math.tanh %191 : vector<8x128xf32>
    %c2_155 = arith.constant 2 : index
    %c0_156 = arith.constant 0 : index
    %c0_157 = arith.constant 0 : index
    %193 = vector.load %arg14[%c2_155, %c0_156, %c0_157] : memref<8x8x128xf32, #tpu.memory_space<vmem>>, vector<1x8x128xf32>
    %194 = vector.shape_cast %193 : vector<1x8x128xf32> to vector<8x128xf32>
    %cst_158 = arith.constant dense<0.000000e+00> : vector<8x128xf32>
    %195 = tpu.matmul %192, %181, %cst_158 {dimension_numbers = #tpu.dot_dimension_numbers<[1], [0], [0], [1], [0, 0, 1, 1], [], []>} : vector<8x128xf32>, vector<128x128xf32>, vector<8x128xf32> -> vector<8x128xf32>
    %196 = arith.addf %194, %195 : vector<8x128xf32>
    %197 = math.tanh %196 : vector<8x128xf32>
    %c3_159 = arith.constant 3 : index
    %c0_160 = arith.constant 0 : index
    %c0_161 = arith.constant 0 : index
    %198 = vector.load %arg14[%c3_159, %c0_160, %c0_161] : memref<8x8x128xf32, #tpu.memory_space<vmem>>, vector<1x8x128xf32>
    %199 = vector.shape_cast %198 : vector<1x8x128xf32> to vector<8x128xf32>
    %cst_162 = arith.constant dense<0.000000e+00> : vector<8x128xf32>
    %200 = tpu.matmul %197, %181, %cst_162 {dimension_numbers = #tpu.dot_dimension_numbers<[1], [0], [0], [1], [0, 0, 1, 1], [], []>} : vector<8x128xf32>, vector<128x128xf32>, vector<8x128xf32> -> vector<8x128xf32>
    %201 = arith.addf %199, %200 : vector<8x128xf32>
    %202 = math.tanh %201 : vector<8x128xf32>
    %c4_163 = arith.constant 4 : index
    %c0_164 = arith.constant 0 : index
    %c0_165 = arith.constant 0 : index
    %203 = vector.load %arg14[%c4_163, %c0_164, %c0_165] : memref<8x8x128xf32, #tpu.memory_space<vmem>>, vector<1x8x128xf32>
    %204 = vector.shape_cast %203 : vector<1x8x128xf32> to vector<8x128xf32>
    %cst_166 = arith.constant dense<0.000000e+00> : vector<8x128xf32>
    %205 = tpu.matmul %202, %181, %cst_166 {dimension_numbers = #tpu.dot_dimension_numbers<[1], [0], [0], [1], [0, 0, 1, 1], [], []>} : vector<8x128xf32>, vector<128x128xf32>, vector<8x128xf32> -> vector<8x128xf32>
    %206 = arith.addf %204, %205 : vector<8x128xf32>
    %207 = math.tanh %206 : vector<8x128xf32>
    %c5_167 = arith.constant 5 : index
    %c0_168 = arith.constant 0 : index
    %c0_169 = arith.constant 0 : index
    %208 = vector.load %arg14[%c5_167, %c0_168, %c0_169] : memref<8x8x128xf32, #tpu.memory_space<vmem>>, vector<1x8x128xf32>
    %209 = vector.shape_cast %208 : vector<1x8x128xf32> to vector<8x128xf32>
    %cst_170 = arith.constant dense<0.000000e+00> : vector<8x128xf32>
    %210 = tpu.matmul %207, %181, %cst_170 {dimension_numbers = #tpu.dot_dimension_numbers<[1], [0], [0], [1], [0, 0, 1, 1], [], []>} : vector<8x128xf32>, vector<128x128xf32>, vector<8x128xf32> -> vector<8x128xf32>
    %211 = arith.addf %209, %210 : vector<8x128xf32>
    %212 = math.tanh %211 : vector<8x128xf32>
    %c6_171 = arith.constant 6 : index
    %c0_172 = arith.constant 0 : index
    %c0_173 = arith.constant 0 : index
    %213 = vector.load %arg14[%c6_171, %c0_172, %c0_173] : memref<8x8x128xf32, #tpu.memory_space<vmem>>, vector<1x8x128xf32>
    %214 = vector.shape_cast %213 : vector<1x8x128xf32> to vector<8x128xf32>
    %cst_174 = arith.constant dense<0.000000e+00> : vector<8x128xf32>
    %215 = tpu.matmul %212, %181, %cst_174 {dimension_numbers = #tpu.dot_dimension_numbers<[1], [0], [0], [1], [0, 0, 1, 1], [], []>} : vector<8x128xf32>, vector<128x128xf32>, vector<8x128xf32> -> vector<8x128xf32>
    %216 = arith.addf %214, %215 : vector<8x128xf32>
    %217 = math.tanh %216 : vector<8x128xf32>
    %c7_175 = arith.constant 7 : index
    %c0_176 = arith.constant 0 : index
    %c0_177 = arith.constant 0 : index
    %218 = vector.load %arg14[%c7_175, %c0_176, %c0_177] : memref<8x8x128xf32, #tpu.memory_space<vmem>>, vector<1x8x128xf32>
    %219 = vector.shape_cast %218 : vector<1x8x128xf32> to vector<8x128xf32>
    %cst_178 = arith.constant dense<0.000000e+00> : vector<8x128xf32>
    %220 = tpu.matmul %217, %181, %cst_178 {dimension_numbers = #tpu.dot_dimension_numbers<[1], [0], [0], [1], [0, 0, 1, 1], [], []>} : vector<8x128xf32>, vector<128x128xf32>, vector<8x128xf32> -> vector<8x128xf32>
    %221 = arith.addf %219, %220 : vector<8x128xf32>
    %222 = math.tanh %221 : vector<8x128xf32>
    %c0_179 = arith.constant 0 : index
    %c0_180 = arith.constant 0 : index
    %223 = vector.load %arg11[%c0_179, %c0_180] : memref<128x10xf32, #tpu.memory_space<vmem>>, vector<128x10xf32>
    %cst_181 = arith.constant dense<0.000000e+00> : vector<8x10xf32>
    %224 = tpu.matmul %222, %223, %cst_181 {dimension_numbers = #tpu.dot_dimension_numbers<[1], [0], [0], [1], [0, 0, 1, 1], [], []>} : vector<8x128xf32>, vector<128x10xf32>, vector<8x10xf32> -> vector<8x10xf32>
    %c0_182 = arith.constant 0 : index
    %c0_183 = arith.constant 0 : index
    %225 = vector.load %arg12[%c0_182, %c0_183] : memref<1x10xf32, #tpu.memory_space<vmem>>, vector<1x10xf32>
    %226 = vector.broadcast %225 : vector<1x10xf32> to vector<8x10xf32>
    %227 = arith.addf %224, %226 : vector<8x10xf32>
    %c0_184 = arith.constant 0 : index
    %c0_185 = arith.constant 0 : index
    %228 = vector.load %arg13[%c0_184, %c0_185] : memref<8x10xf32, #tpu.memory_space<vmem>>, vector<8x10xf32>
    tpu.vector_store %arg13[%c0_184, %c0_185], %227 {strides = array<i32>} : memref<8x10xf32, #tpu.memory_space<vmem>>, vector<8x10xf32>,
    return
  }
  func.func @transform_0(%arg0: i32) -> (i32, i32, i32) {
    %c0_i32 = arith.constant 0 : i32
    %c0_i32_0 = arith.constant 0 : i32
    %c0_i32_1 = arith.constant 0 : i32
    return %c0_i32, %arg0, %c0_i32_0 : i32, i32, i32
  }
  func.func @transform_1(%arg0: i32) -> (i32, i32) {
    %c0_i32 = arith.constant 0 : i32
    %c0_i32_0 = arith.constant 0 : i32
    %c0_i32_1 = arith.constant 0 : i32
    return %c0_i32, %c0_i32_0 : i32, i32
  }
  func.func @transform_2(%arg0: i32) -> (i32, i32) {
    %c0_i32 = arith.constant 0 : i32
    %c0_i32_0 = arith.constant 0 : i32
    %c0_i32_1 = arith.constant 0 : i32
    return %c0_i32, %c0_i32_0 : i32, i32
  }
  func.func @transform_3(%arg0: i32) -> (i32, i32) {
    %c0_i32 = arith.constant 0 : i32
    %c0_i32_0 = arith.constant 0 : i32
    %c0_i32_1 = arith.constant 0 : i32
    return %c0_i32, %c0_i32_0 : i32, i32
  }
  func.func @transform_4(%arg0: i32) -> (i32, i32) {
    %c0_i32 = arith.constant 0 : i32
    %c0_i32_0 = arith.constant 0 : i32
    %c0_i32_1 = arith.constant 0 : i32
    return %c0_i32, %c0_i32_0 : i32, i32
  }
  func.func @transform_5(%arg0: i32) -> (i32, i32) {
    %c0_i32 = arith.constant 0 : i32
    %c0_i32_0 = arith.constant 0 : i32
    %c0_i32_1 = arith.constant 0 : i32
    return %c0_i32, %c0_i32_0 : i32, i32
  }
  func.func @transform_6(%arg0: i32) -> (i32, i32) {
    %c0_i32 = arith.constant 0 : i32
    %c0_i32_0 = arith.constant 0 : i32
    %c0_i32_1 = arith.constant 0 : i32
    return %c0_i32, %c0_i32_0 : i32, i32
  }
  func.func @transform_7(%arg0: i32) -> (i32, i32) {
    %c0_i32 = arith.constant 0 : i32
    %c0_i32_0 = arith.constant 0 : i32
    %c0_i32_1 = arith.constant 0 : i32
    return %c0_i32, %c0_i32_0 : i32, i32
  }
  func.func @transform_8(%arg0: i32) -> (i32, i32) {
    %c0_i32 = arith.constant 0 : i32
    %c0_i32_0 = arith.constant 0 : i32
    %c0_i32_1 = arith.constant 0 : i32
    return %c0_i32, %c0_i32_0 : i32, i32
  }
  func.func @transform_9(%arg0: i32) -> (i32, i32) {
    %c0_i32 = arith.constant 0 : i32
    %c0_i32_0 = arith.constant 0 : i32
    %c0_i32_1 = arith.constant 0 : i32
    return %c0_i32, %c0_i32_0 : i32, i32
  }
  func.func @transform_10(%arg0: i32) -> (i32, i32) {
    %c0_i32 = arith.constant 0 : i32
    %c0_i32_0 = arith.constant 0 : i32
    %c0_i32_1 = arith.constant 0 : i32
    return %c0_i32, %c0_i32_0 : i32, i32
  }
  func.func @transform_11(%arg0: i32) -> (i32, i32) {
    %c0_i32 = arith.constant 0 : i32
    %c0_i32_0 = arith.constant 0 : i32
    %c0_i32_1 = arith.constant 0 : i32
    return %c0_i32, %c0_i32_0 : i32, i32
  }
  func.func @transform_12(%arg0: i32) -> (i32, i32) {
    %c0_i32 = arith.constant 0 : i32
    %c0_i32_0 = arith.constant 0 : i32
    return %arg0, %c0_i32 : i32, i32
  }
}

</mosaic_0001>

<bundles_post_ra>
// kernel: tpu_custom_call.1
= control target key start
LH: loop header
LB: loop body
LE: loop exit
PB: predicated region body
PF: predicated region fallthrough
CT: control target
= control target key end

     0   :  { %17 = vsyncpa [#allocation5], 0  ;;  %s8006_s0 = inlined_call_operand.hbm [shape: f32[8,8,28], index: 0, kind: input, shape index: {}]   ;;  %s8007_s1 = inlined_call_operand.hbm [shape: f32[28,128], index: 1, kind: input, shape index: {}]   ;;  %s8008_s2 = inlined_call_operand.vmem [shape: f32[128,128], index: 2, kind: input, shape index: {}]   ;;  %s8009_s3 = inlined_call_operand.vmem [shape: f32[1,128], index: 3, kind: input, shape index: {}]   ;;  %s8010_s4 = inlined_call_operand.hbm [shape: f32[128,128], index: 4, kind: input, shape index: {}]   ;;  %s8011_s5 = inlined_call_operand.hbm [shape: f32[128,128], index: 5, kind: input, shape index: {}]   ;;  %s8012_s6 = inlined_call_operand.vmem [shape: f32[1,128], index: 6, kind: input, shape index: {}]   ;;  %s8013_s7 = inlined_call_operand.hbm [shape: f32[128,128], index: 7, kind: input, shape index: {}]   ;;  %s8014_s8 = inlined_call_operand.hbm [shape: f32[128,128], index: 8, kind: input, shape index: {}]   ;;  %s8015_s9 = inlined_call_operand.vmem [shape: f32[1,128], index: 9, kind: input, shape index: {}]   ;;  %s8016_s10 = inlined_call_operand.vmem [shape: f32[128,10], index: 10, kind: input, shape index: {}]   ;;  %s8017_s11 = inlined_call_operand.vmem [shape: f32[1,10], index: 11, kind: input, shape index: {}]   ;;  %s8018_s12 = inlined_call_operand.hbm [shape: f32[8,10], index: 12, kind: output, shape index: {}]  }
   0x1   :  { %18 = vsyncpa [#allocation8], 0 }
   0x2   :  { %19 = vsyncpa [#allocation11], 0 }
   0x3   :  { %20 = vsyncpa [#allocation14], 0 }
   0x4   :  { %21 = vsyncpa [#allocation6], 0  ;;  %s6838_s21 = smov [#allocation7]   ;;  %s6839_s23 = smov [#allocation10]  }
   0x5   :  { %s39_s22 = sshll.u32 %s6838_s21, 4  ;;  %s67_s24 = sshll.u32 %s6839_s23, 4  ;;  %s40_s22 = int_to_ptr.vmem [resolvable:$true] %s39_s22  ;;  %s6916_s24 = int_to_ptr.vmem [resolvable:$true] %s67_s24 }
   0x6   :  { %s6674_s27 = scalar_lea.hbm %s8007_s1, 512 }
   0x7   :  { %p6675_p0 = scmp.ne.s32.totalorder %s8007_s1, %s6674_s27  ;;  %p6678_p1 = scmp.lt.u32.totalorder %s6674_s27, %s8007_s1 }
   0x9   :  { %p6680_p2 = pnand %p6678_p1, %p6675_p0 }
   0xb   :  { %6683 = shalt.err (!%p6680_p2)
}
   0xc   :  { %s6684_s14 = scalar_lea.vmem %s40_s22, 512  ;;  %p6689_p4 = scmp.lt.s32.totalorder %s40_s22, %s40_s22 }
   0xd   :  { %p6685_p3 = scmp.ne.s32.totalorder %s40_s22, %s6684_s14  ;;  %p6690_p5 = scmp.lt.s32.totalorder %s6684_s14, %s6684_s14 }
   0xf   :  { %p6691_p6 = por %p6690_p5, %p6689_p4 }
  0x11   :  { %p6692_p7 = pnand %p6691_p6, %p6685_p3 }
  0x13   :  { %6695 = shalt.err (!%p6692_p7)
}
  0x14   :  { %s6840_s15 = smov 128   ;;  %s6841_s16 = smov 8  }
  0x15   :  { %45 = dma.hbm_to_vmem [thread:$0]  %s8007_s1, 512, %s40_s22, [#allocation8], %s6840_s15, %s6840_s15, %s6841_s16  }
  0x16   :  { %s6696_s21 = scalar_lea.hbm %s8011_s5, 2048 }
  0x17   :  { %p6697_p8 = scmp.ne.s32.totalorder %s8011_s5, %s6696_s21  ;;  %p6700_p9 = scmp.lt.u32.totalorder %s6696_s21, %s8011_s5 }
  0x19   :  { %p6702_p10 = pnand %p6700_p9, %p6697_p8 }
  0x1b   :  { %6705 = shalt.err (!%p6702_p10)
}
  0x1c   :  { %s6706_s28 = scalar_lea.vmem %s6916_s24, 2048  ;;  %p6711_p12 = scmp.lt.s32.totalorder %s6916_s24, %s6916_s24 }
  0x1d   :  { %p6707_p11 = scmp.ne.s32.totalorder %s6916_s24, %s6706_s28  ;;  %p6712_p13 = scmp.lt.s32.totalorder %s6706_s28, %s6706_s28 }
  0x1f   :  { %p6713_p0 = por %p6712_p13, %p6711_p12 }
  0x21   :  { %p6714_p1 = pnand %p6713_p0, %p6707_p11 }
  0x23   :  { %6717 = shalt.err (!%p6714_p1)
}
  0x24   :  { %73 = dma.hbm_to_vmem [thread:$0]  %s8011_s5, 2048, %s6916_s24, [#allocation11], %s6840_s15, %s6840_s15, %s6841_s16  }
  0x25   :  { %s6842_s29 = smov [#allocation4]   ;;  %s6843_s13 = smov [#allocation9]  }
  0x26   :  { %s27_s30 = sshll.u32 %s6842_s29, 4  ;;  %s55_s14 = sshll.u32 %s6843_s13, 4  ;;  %s28_s30 = int_to_ptr.vmem [resolvable:$true] %s27_s30  ;;  %s6953_s14 = int_to_ptr.vmem [resolvable:$true] %s55_s14 }
  0x27   :  { %s6718_s19 = scalar_lea.hbm %s8006_s0, 1024 }
  0x28   :  { %p6719_p2 = scmp.ne.s32.totalorder %s8006_s0, %s6718_s19  ;;  %p6722_p3 = scmp.lt.u32.totalorder %s6718_s19, %s8006_s0 }
  0x2a   :  { %p6724_p4 = pnand %p6722_p3, %p6719_p2 }
  0x2c   :  { %6727 = shalt.err (!%p6724_p4)
}
  0x2d   :  { %s6728_s5 = scalar_lea.vmem %s28_s30, 1024  ;;  %p6733_p6 = scmp.lt.s32.totalorder %s28_s30, %s28_s30 }
  0x2e   :  { %p6729_p5 = scmp.ne.s32.totalorder %s28_s30, %s6728_s5  ;;  %p6734_p7 = scmp.lt.s32.totalorder %s6728_s5, %s6728_s5 }
  0x30   :  { %p6735_p8 = por %p6734_p7, %p6733_p6 }
  0x32   :  { %p6736_p9 = pnand %p6735_p8, %p6729_p5 }
  0x34   :  { %6739 = shalt.err (!%p6736_p9)
}
  0x35   :  { %33 = dma.hbm_to_vmem [thread:$0]  %s8006_s0, 1024, %s28_s30, [#allocation5], %s6840_s15, %s6840_s15, %s6841_s16  }
  0x36   :  { %s6740_s1 = scalar_lea.hbm %s8010_s4, 2048 }
  0x37   :  { %p6741_p10 = scmp.ne.s32.totalorder %s8010_s4, %s6740_s1  ;;  %p6744_p11 = scmp.lt.u32.totalorder %s6740_s1, %s8010_s4 }
  0x39   :  { %p6746_p12 = pnand %p6744_p11, %p6741_p10 }
  0x3b   :  { %6749 = shalt.err (!%p6746_p12)
}
  0x3c   :  { %s6750_s18 = scalar_lea.vmem %s6953_s14, 2048  ;;  %p6755_p0 = scmp.lt.s32.totalorder %s6953_s14, %s6953_s14 }
  0x3d   :  { %p6751_p13 = scmp.ne.s32.totalorder %s6953_s14, %s6750_s18  ;;  %p6756_p1 = scmp.lt.s32.totalorder %s6750_s18, %s6750_s18 }
  0x3f   :  { %p6757_p2 = por %p6756_p1, %p6755_p0 }
  0x41   :  { %p6758_p3 = pnand %p6757_p2, %p6751_p13 }
  0x43   :  { %6761 = shalt.err (!%p6758_p3)
}
  0x44   :  { %61 = dma.hbm_to_vmem [thread:$0]  %s8010_s4, 2048, %s6953_s14, [#allocation8], %s6840_s15, %s6840_s15, %s6841_s16  }
  0x45   :  { %s6844_s19 = smov [#allocation12]   ;;  %s6845_s21 = smov [#allocation13]  }
  0x46   :  { %s81_s20 = sshll.u32 %s6844_s19, 4  ;;  %s93_s23 = sshll.u32 %s6845_s21, 4  ;;  %s82_s20 = int_to_ptr.vmem [resolvable:$true] %s81_s20  ;;  %s6990_s23 = int_to_ptr.vmem [resolvable:$true] %s93_s23 }
  0x47   :  { %s6762_s24 = scalar_lea.hbm %s8013_s7, 2048 }
  0x48   :  { %p6763_p4 = scmp.ne.s32.totalorder %s8013_s7, %s6762_s24  ;;  %p6766_p5 = scmp.lt.u32.totalorder %s6762_s24, %s8013_s7 }
  0x4a   :  { %p6768_p6 = pnand %p6766_p5, %p6763_p4 }
  0x4c   :  { %6771 = shalt.err (!%p6768_p6)
}
  0x4d   :  { %s6772_s4 = scalar_lea.vmem %s82_s20, 2048  ;;  %p6777_p8 = scmp.lt.s32.totalorder %s82_s20, %s82_s20 }
  0x4e   :  { %p6773_p7 = scmp.ne.s32.totalorder %s82_s20, %s6772_s4  ;;  %p6778_p9 = scmp.lt.s32.totalorder %s6772_s4, %s6772_s4 }
  0x50   :  { %p6779_p10 = por %p6778_p9, %p6777_p8 }
  0x52   :  { %p6780_p11 = pnand %p6779_p10, %p6773_p7 }
  0x54   :  { %6783 = shalt.err (!%p6780_p11)
}
  0x55   :  { %87 = dma.hbm_to_vmem [thread:$0]  %s8013_s7, 2048, %s82_s20, [#allocation11], %s6840_s15, %s6840_s15, %s6841_s16  }
  0x56   :  { %s6784_s17 = scalar_lea.hbm %s8014_s8, 2048 }
  0x57   :  { %p6785_p12 = scmp.ne.s32.totalorder %s8014_s8, %s6784_s17  ;;  %p6788_p13 = scmp.lt.u32.totalorder %s6784_s17, %s8014_s8 }
  0x59   :  { %p6790_p0 = pnand %p6788_p13, %p6785_p12 }
  0x5b   :  { %6793 = shalt.err (!%p6790_p0)
}
  0x5c   :  { %s6794_s21 = scalar_lea.vmem %s6990_s23, 2048  ;;  %p6799_p2 = scmp.lt.s32.totalorder %s6990_s23, %s6990_s23 }
  0x5d   :  { %p6795_p1 = scmp.ne.s32.totalorder %s6990_s23, %s6794_s21  ;;  %p6800_p3 = scmp.lt.s32.totalorder %s6794_s21, %s6794_s21 }
  0x5f   :  { %p6801_p4 = por %p6800_p3, %p6799_p2 }
  0x61   :  { %p6802_p5 = pnand %p6801_p4, %p6795_p1 }
  0x63   :  { %6805 = shalt.err (!%p6802_p5)
}
  0x64   :  { %99 = dma.hbm_to_vmem [thread:$0]  %s8014_s8, 2048, %s6990_s23, [#allocation14], %s6840_s15, %s6840_s15, %s6841_s16  }
  0x65   :  { %6828 = dma.done.wait [#allocation5], 1024  }
  0x66   :  { %6829 = vsyncadd [#allocation5], 4294966272 }
  0x67   :  { %6830 = dma.done.wait [#allocation8], 2560  }
  0x68   :  { %6831 = vsyncadd [#allocation8], 4294964736 }
  0x69   :  { %6832 = dma.done.wait [#allocation11], 4096  }
  0x6a   :  { %6833 = vsyncadd [#allocation11], 4294963200 }
  0x6b   :  { %6834 = dma.done.wait [#allocation14], 2048  }
  0x6c   :  { %6835 = vsyncadd [#allocation14], 4294965248  ;;  %v6846_v0 = vmov 0.0|0.0   ;;  %vm6847_vm0 = vmmov 0   ;;  %v6848_v1 = vmov 0.0   ;;  %vm168_vm1 = vcmask 1043456  }
  0x6d   :  { %5725 = vmatprep.subr.bf16.mxu1 %v6846_v0  ;;  %4378 = vmatprep.mubr.msk.f32.mxu1 %vm6847_vm0, %v6848_v1  ;;  %vm143_vm2 = vcmask 228352   ;;  %v132_v2 = vld [vmem:[#allocation7] sm:$0xff]  ;;  %v133_v3 = vld [vmem:[#allocation7 + $0x8] sm:$0xff]  ;;  %v134_v4 = vld [vmem:[#allocation7 + $0x10] sm:$0xff]  ;;  %vm6849_vm3 = vmmov 1   ;;  %s6850_s17 = smov [#allocation15]  }
  0x6e   :  { %v5571_v5 = vpack.c.bf16 %v133_v3, %v132_v2  ;;  %v135_v6 = vld [vmem:[#allocation7 + $0x18] sm:$0xf]  ;;  %v124_v7 = vld [vmem:[#allocation4] sm:$0xff]  ;;  %vm5576_vm4 = vmpackc.low %vm168_vm1, %vm6849_vm3  ;;  %s3382_s18 = sshll.u32 %s6850_s17, 4  ;;  %vm3374_vm5 = vcmask 80896   ;;  %s3383_s18 = int_to_ptr.vmem [resolvable:$true] %s3382_s18 }
  0x6f   :  { %v5575_v8 = vpack.c.bf16 %v135_v6, %v134_v4  ;;  %4124 = vmatprep.mubr.msk.f32.mxu0 %vm143_vm2, %v124_v7  ;;  %v285_v9 = vld [vmem:[%s8008_s2] sm:$0xff]  ;;  %v286_v10 = vld [vmem:[%s8008_s2 + $0x8] sm:$0xff]  ;;  %v287_v12 = vld [vmem:[%s8008_s2 + $0x10] sm:$0xff]  ;;  %p6811_p7 = scmp.lt.s32.totalorder %s3383_s18, %s3383_s18 }
  0x70   :  { %5572 = vmatprep.subr.bf16.mxu0 %v5571_v5  ;;  %v7037_v11 = vpack.c.bf16 %v286_v10, %v285_v9  ;;  %v288_v13 = vld [vmem:[%s8008_s2 + $0x18] sm:$0xff]  ;;  %v125_v15 = vld [vmem:[#allocation4 + $0x8] sm:$0xff]  ;;  %v289_v16 = vld [vmem:[%s8008_s2 + $0x20] sm:$0xff] }
  0x71   :  { %5574 = vmatpush3.bf16.msra.mxu0 %v5571_v5  ;;  %v7047_v14 = vpack.c.bf16 %v288_v13, %v287_v12  ;;  %v290_v17 = vld [vmem:[%s8008_s2 + $0x28] sm:$0xff]  ;;  %v126_v18 = vld [vmem:[#allocation4 + $0x10] sm:$0xff]  ;;  %v292_v21 = vld [vmem:[%s8008_s2 + $0x38] sm:$0xff] }
  0x72   :  { %5577 = vmatprep.subr.msk.bf16.mxu0 %vm5576_vm4, %v5575_v8  ;;  %5727 = vmatpush3.bf16.msra.mxu1 %v7037_v11  ;;  %v7059_v19 = vpack.c.bf16 %v290_v17, %v289_v16  ;;  %v291_v20 = vld [vmem:[%s8008_s2 + $0x30] sm:$0xff]  ;;  %v127_v22 = vld [vmem:[#allocation4 + $0x18] sm:$0xff]  ;;  %v128_v23 = vld [vmem:[#allocation4 + $0x20] sm:$0xff] }
  0x73   :  { %5728 = vmatprep.subr.bf16.mxu1 %v6846_v0  ;;  %v7072_v24 = vpack.c.bf16 %v292_v21, %v291_v20  ;;  %v293_v25 = vld [vmem:[%s8008_s2 + $0x40] sm:$0xff]  ;;  %v294_v26 = vld [vmem:[%s8008_s2 + $0x48] sm:$0xff]  ;;  %v130_v28 = vld [vmem:[#allocation4 + $0x30] sm:$0xff] }
  0x74   :  { %v129_v27 = vld [vmem:[#allocation4 + $0x28] sm:$0xff]  ;;  %v7086_v29 = vpack.c.bf16 %v294_v26, %v293_v25  ;;  %v295_v30 = vld [vmem:[%s8008_s2 + $0x50] sm:$0xff]  ;;  %v296_v31 = vld [vmem:[%s8008_s2 + $0x58] sm:$0xff] }
  0x75   :  { %5580 = vmatpush3.bf16.msk.msra.mxu0 %vm5576_vm4, %v5575_v8  ;;  %v131_v32 = vld [vmem:[#allocation4 + $0x38] sm:$0xff]  ;;  %v7100_v33 = vpack.c.bf16 %v296_v31, %v295_v30  ;;  %v297_v34 = vld [vmem:[%s8008_s2 + $0x60] sm:$0xff]  ;;  %v298_v35 = vld [vmem:[%s8008_s2 + $0x68] sm:$0xff] }
  0x76   :  { %5581 = vmatprep.subr.bf16.mxu0 %v6846_v0  ;;  %5730 = vmatpush3.bf16.msra.mxu1 %v7047_v14  ;;  %v7115_v36 = vpack.c.bf16 %v298_v35, %v297_v34  ;;  %v299_v37 = vld [vmem:[%s8008_s2 + $0x70] sm:$0xff]  ;;  %v300_v38 = vld [vmem:[%s8008_s2 + $0x78] sm:$0xff]  ;;  %v301_v40 = vld [vmem:[#allocation9] sm:$0xff] }
  0x77   :  { %5731 = vmatprep.subr.bf16.mxu1 %v6846_v0  ;;  %v7127_v39 = vpack.c.bf16 %v300_v38, %v299_v37  ;;  %v302_v41 = vld [vmem:[#allocation9 + $0x8] sm:$0xff]  ;;  %v303_v42 = vld [vmem:[#allocation9 + $0x10] sm:$0xff]  ;;  %v304_v44 = vld [vmem:[#allocation9 + $0x18] sm:$0xff] }
  0x78   :  { %4125 = vmatmul.mubr.msk.f32.vlgmr.msra.gmra.mrb[0].mxu0 %vm143_vm2, %v125_v15  ;;  %v7140_v43 = vpack.c.bf16 %v302_v41, %v301_v40  ;;  %v7143_v45 = vpack.c.bf16 %v304_v44, %v303_v42  ;;  %v305_v46 = vld [vmem:[#allocation9 + $0x20] sm:$0xff]  ;;  %v306_v47 = vld [vmem:[#allocation9 + $0x28] sm:$0xff]  ;;  %v307_v49 = vld [vmem:[#allocation9 + $0x30] sm:$0xff] }
  0x79   :  { %5583 = vmatpush3.bf16.msra.mxu0 %v7037_v11  ;;  %4127 = vmatprep.mubr.msk.f32.mxu0 %vm143_vm2, %v126_v18  ;;  %v7147_v48 = vpack.c.bf16 %v306_v47, %v305_v46  ;;  %v308_v50 = vld [vmem:[#allocation9 + $0x38] sm:$0xff]  ;;  %v309_v52 = vld [vmem:[#allocation9 + $0x40] sm:$0xff]  ;;  %v310_v53 = vld [vmem:[#allocation9 + $0x48] sm:$0xff] }
  0x7a   :  { %5584 = vmatprep.subr.bf16.mxu0 %v6846_v0  ;;  %5733 = vmatpush3.bf16.msra.mxu1 %v7059_v19  ;;  %v7151_v51 = vpack.c.bf16 %v308_v50, %v307_v49  ;;  %v7155_v54 = vpack.c.bf16 %v310_v53, %v309_v52  ;;  %v311_v55 = vld [vmem:[#allocation9 + $0x50] sm:$0xff]  ;;  %v312_v56 = vld [vmem:[#allocation9 + $0x58] sm:$0xff]  ;;  %v313_v58 = vld [vmem:[#allocation9 + $0x60] sm:$0xff] }
  0x7b   :  { %5734 = vmatprep.subr.bf16.mxu1 %v6846_v0  ;;  %v7160_v57 = vpack.c.bf16 %v312_v56, %v311_v55  ;;  %v314_v59 = vld [vmem:[#allocation9 + $0x68] sm:$0xff]  ;;  %v315_v60 = vld [vmem:[#allocation9 + $0x70] sm:$0xff]  ;;  %v316_v62 = vld [vmem:[#allocation9 + $0x78] sm:$0xff] }
  0x7c   :  { %4128 = vmatmul.mubr.msk.f32.gmra.mrb[2].mxu0 %vm143_vm2, %v127_v22  ;;  %v7164_v61 = vpack.c.bf16 %v314_v59, %v313_v58  ;;  %v7167_v63 = vpack.c.bf16 %v316_v62, %v315_v60  ;;  %v3394_v2 = vld [vmem:[%s8009_s3] ss:$0 sm:$0xff]  ;;  %v1512_v56 = vld [vmem:[#allocation12 + $0x30] sm:$0xff]  ;;  %v1515_v60 = vld [vmem:[#allocation12 + $0x48] sm:$0xff] }
  0x7d   :  { %5586 = vmatpush3.bf16.msra.mxu0 %v7047_v14  ;;  %4130 = vmatprep.mubr.msk.f32.mxu0 %vm143_vm2, %v128_v23  ;;  %v1514_v59 = vld [vmem:[#allocation12 + $0x40] sm:$0xff] }
  0x7e   :  { %5587 = vmatprep.subr.bf16.mxu0 %v6846_v0  ;;  %5736 = vmatpush3.bf16.msra.mxu1 %v7072_v24 }
  0x7f   :  { %5737 = vmatprep.subr.bf16.mxu1 %v6846_v0 }
  0x80   :  { %4131 = vmatmul.mubr.msk.f32.gmra.mrb[4].mxu0 %vm143_vm2, %v129_v27 }
  0x81   :  { %5589 = vmatpush3.bf16.msra.mxu0 %v7059_v19  ;;  %4133 = vmatprep.mubr.msk.f32.mxu0 %vm143_vm2, %v130_v28 }
  0x82   :  { %5590 = vmatprep.subr.bf16.mxu0 %v6846_v0  ;;  %5739 = vmatpush3.bf16.msra.mxu1 %v7086_v29 }
  0x83   :  { %5740 = vmatprep.subr.bf16.mxu1 %v6846_v0 }
  0x84   :  { %4134 = vmatmul.mubr.msk.f32.gmra.mrb[6].mxu0 %vm143_vm2, %v131_v32 }
  0x85   :  { %5592 = vmatpush3.bf16.msra.mxu0 %v7072_v24  ;;  %4168 = vmatprep.mubr.msk.f32.mxu0 %vm6847_vm0, %v6848_v1 }
  0x86   :  { %5593 = vmatprep.subr.bf16.mxu0 %v6846_v0  ;;  %5742 = vmatpush3.bf16.msra.mxu1 %v7100_v33 }
  0x87   :  { %5743 = vmatprep.subr.bf16.mxu1 %v6846_v0 }
  0x89   :  { %5595 = vmatpush3.bf16.msra.mxu0 %v7086_v29 }
  0x8a   :  { %5596 = vmatprep.subr.bf16.mxu0 %v6846_v0  ;;  %5745 = vmatpush3.bf16.msra.mxu1 %v7115_v36 }
  0x8b   :  { %5746 = vmatprep.subr.bf16.mxu1 %v6846_v0 }
  0x8d   :  { %5598 = vmatpush3.bf16.msra.mxu0 %v7100_v33 }
  0x8e   :  { %5599 = vmatprep.subr.bf16.mxu0 %v6846_v0  ;;  %5748 = vmatpush3.bf16.msra.mxu1 %v7127_v39 }
  0x8f   :  { %5773 = vmatprep.subr.bf16.mxu1 %v6846_v0 }
  0x91   :  { %5601 = vmatpush3.bf16.msra.mxu0 %v7115_v36 }
  0x92   :  { %5602 = vmatprep.subr.bf16.mxu0 %v6846_v0 }
  0x95   :  { %5604 = vmatpush3.bf16.msra.mxu0 %v7127_v39 }
  0x96   :  { %5605 = vmatprep.subr.bf16.mxu0 %v6846_v0 }
  0x98   :  { %4169 = vmatmul.mubr.f32.vlgmr.msra.gmra.mrb[8].mxu0 %v6848_v1 }
  0x99   :  { %4203 = vmatprep.mubr.msk.f32.mxu0 %vm6847_vm0, %v6848_v1  ;;  %5607 = vmatpush3.bf16.msra.mxu0 %v7140_v43 }
  0x9a   :  { %5608 = vmatprep.subr.bf16.mxu0 %v6846_v0 }
  0x9d   :  { %5610 = vmatpush3.bf16.msra.mxu0 %v7143_v45 }
  0x9e   :  { %5611 = vmatprep.subr.bf16.mxu0 %v6846_v0 }
  0xa1   :  { %5613 = vmatpush3.bf16.msra.mxu0 %v7147_v48 }
  0xa2   :  { %5614 = vmatprep.subr.bf16.mxu0 %v6846_v0 }
  0xa5   :  { %5616 = vmatpush3.bf16.msra.mxu0 %v7151_v51 }
  0xa6   :  { %5617 = vmatprep.subr.bf16.mxu0 %v6846_v0 }
  0xa9   :  { %5619 = vmatpush3.bf16.msra.mxu0 %v7155_v54 }
  0xaa   :  { %5620 = vmatprep.subr.bf16.mxu0 %v6846_v0 }
  0xad   :  { %5622 = vmatpush3.bf16.msra.mxu0 %v7160_v57 }
  0xae   :  { %5623 = vmatprep.subr.bf16.mxu0 %v6846_v0 }
  0xb1   :  { %5625 = vmatpush3.bf16.msra.mxu0 %v7164_v61 }
  0xb2   :  { %5626 = vmatprep.subr.bf16.mxu0 %v6846_v0 }
  0xb5   :  { %5628 = vmatpush3.bf16.msra.mxu0 %v7167_v63 }
  0xb6   :  { %5629 = vmatprep.subr.bf16.mxu0 %v6846_v0 }
 0x14b   :  { %v4126_v3 = vpop.f32.mrb[0].mxu0 }
 0x14c   :  { %v244_v4 = vadd.f32 %v4126_v3, %v3394_v2  ;;  %v238_v5 = vpop.f32.mrb[1].mxu0  ;;  %v1490_v3 = vld [vmem:[#allocation10] sm:$0xff] }
 0x14d   :  { %v239_v21 = vadd.f32 %v3394_v2, %v238_v5 }
 0x14f   :  { %v4129_v6 = vpop.f32.mrb[2].mxu0 }
 0x150   :  { %v7175_v7 = vadd.f32 %v4129_v6, %v3394_v2  ;;  %v248_v8 = vpop.f32.mrb[3].mxu0  ;;  %v1492_v6 = vld [vmem:[#allocation10 + $0x10] sm:$0xff] }
 0x151   :  { %v7177_v9 = vadd.f32 %v3394_v2, %v248_v8 }
 0x153   :  { %v4132_v10 = vpop.f32.mrb[4].mxu0 }
 0x154   :  { %v7179_v12 = vadd.f32 %v4132_v10, %v3394_v2  ;;  %v258_v13 = vpop.f32.mrb[5].mxu0  ;;  %v1494_v10 = vld [vmem:[#allocation10 + $0x20] sm:$0xff] }
 0x155   :  { %v7181_v15 = vadd.f32 %v3394_v2, %v258_v13 }
 0x157   :  { %v4135_v16 = vpop.f32.mrb[6].mxu0 }
 0x158   :  { %v7183_v17 = vadd.f32 %v4135_v16, %v3394_v2  ;;  %v268_v18 = vpop.f32.mrb[7].mxu0  ;;  %v1497_v16 = vld [vmem:[#allocation10 + $0x38] sm:$0xff] }
 0x159   :  { %v7185_v20 = vadd.f32 %v3394_v2, %v268_v18  ;;  %v1498_v18 = vld [vmem:[#allocation10 + $0x40] sm:$0xff] }
 0x16b   :  { %v391_v22 = vpop.f32.mrb[8].mxu0 }
 0x16c   :  { %v395_v23 = vadd.f32 %v391_v22, %v239_v21  ;;  %v4170_v25 = vpop.f32.mrb[9].mxu0  ;;  %v1500_v22 = vld [vmem:[#allocation10 + $0x50] sm:$0xff] }
 0x16e   :  { %6626 = vtanh.f32 %v395_v23  ;;  %v1501_v23 = vld [vmem:[#allocation10 + $0x58] sm:$0xff] }
 0x16f   :  { %v7470_v25 = vpack.c.bf16 %v1501_v23, %v1500_v22  ;;  %v2689_v23 = vld [vmem:[#allocation13 + $0x40] sm:$0xff] }
 0x178   :  { %v6627_v26 = vpop.eup %6626 }
 0x179   :  { %4204 = vmatmul.mubr.f32.vlgmr.msra.gmra.mrb[10].mxu0 %v6627_v26 }
 0x17a   :  { %5631 = vmatpush3.bf16.msra.mxu0 %v7037_v11  ;;  %4238 = vmatprep.mubr.msk.f32.mxu0 %vm6847_vm0, %v6848_v1 }
 0x17b   :  { %5632 = vmatprep.subr.bf16.mxu0 %v6846_v0 }
 0x17e   :  { %5634 = vmatpush3.bf16.msra.mxu0 %v7047_v14 }
 0x17f   :  { %5635 = vmatprep.subr.bf16.mxu0 %v6846_v0 }
 0x182   :  { %5637 = vmatpush3.bf16.msra.mxu0 %v7059_v19 }
 0x183   :  { %5638 = vmatprep.subr.bf16.mxu0 %v6846_v0 }
 0x186   :  { %5640 = vmatpush3.bf16.msra.mxu0 %v7072_v24 }
 0x187   :  { %5641 = vmatprep.subr.bf16.mxu0 %v6846_v0 }
 0x18a   :  { %5643 = vmatpush3.bf16.msra.mxu0 %v7086_v29 }
 0x18b   :  { %5644 = vmatprep.subr.bf16.mxu0 %v6846_v0 }
 0x18e   :  { %5646 = vmatpush3.bf16.msra.mxu0 %v7100_v33 }
 0x18f   :  { %5647 = vmatprep.subr.bf16.mxu0 %v6846_v0 }
 0x192   :  { %5649 = vmatpush3.bf16.msra.mxu0 %v7115_v36 }
 0x193   :  { %5650 = vmatprep.subr.bf16.mxu0 %v6846_v0 }
 0x196   :  { %5652 = vmatpush3.bf16.msra.mxu0 %v7127_v39 }
 0x197   :  { %5653 = vmatprep.subr.bf16.mxu0 %v6846_v0 }
 0x199   :  { %4239 = vmatmul.mubr.f32.vlgmr.msra.gmra.mrb[12].mxu0 %v6627_v26  ;;  %v1502_v26 = vld [vmem:[#allocation10 + $0x60] sm:$0xff] }
 0x19a   :  { %5655 = vmatpush3.bf16.msra.mxu0 %v7140_v43  ;;  %4273 = vmatprep.mubr.msk.f32.mxu0 %vm6847_vm0, %v6848_v1 }
 0x19b   :  { %5656 = vmatprep.subr.bf16.mxu0 %v6846_v0 }
 0x19e   :  { %5658 = vmatpush3.bf16.msra.mxu0 %v7143_v45 }
 0x19f   :  { %5659 = vmatprep.subr.bf16.mxu0 %v6846_v0 }
 0x1a2   :  { %5661 = vmatpush3.bf16.msra.mxu0 %v7147_v48 }
 0x1a3   :  { %5662 = vmatprep.subr.bf16.mxu0 %v6846_v0 }
 0x1a6   :  { %5664 = vmatpush3.bf16.msra.mxu0 %v7151_v51 }
 0x1a7   :  { %5665 = vmatprep.subr.bf16.mxu0 %v6846_v0 }
 0x1aa   :  { %5667 = vmatpush3.bf16.msra.mxu0 %v7155_v54 }
 0x1ab   :  { %5668 = vmatprep.subr.bf16.mxu0 %v6846_v0 }
 0x1ae   :  { %5670 = vmatpush3.bf16.msra.mxu0 %v7160_v57 }
 0x1af   :  { %5671 = vmatprep.subr.bf16.mxu0 %v6846_v0 }
 0x1b2   :  { %5673 = vmatpush3.bf16.msra.mxu0 %v7164_v61 }
 0x1b3   :  { %5674 = vmatprep.subr.bf16.mxu0 %v6846_v0 }
 0x1b6   :  { %5676 = vmatpush3.bf16.msra.mxu0 %v7167_v63 }
 0x1b7   :  { %5677 = vmatprep.subr.bf16.mxu0 %v6846_v0 }
 0x26c   :  { %v536_v27 = vpop.f32.mrb[12].mxu0 }
 0x26d   :  { %v540_v28 = vadd.f32 %v536_v27, %v244_v4  ;;  %v4240_v30 = vpop.f32.mrb[13].mxu0  ;;  %v1491_v4 = vld [vmem:[#allocation10 + $0x8] sm:$0xff] }
 0x26e   :  { %v7449_v5 = vpack.c.bf16 %v1491_v4, %v1490_v3  ;;  %v1503_v27 = vld [vmem:[#allocation10 + $0x68] sm:$0xff]  ;;  %v1504_v30 = vld [vmem:[#allocation10 + $0x70] sm:$0xff] }
 0x26f   :  { %6628 = vtanh.f32 %v540_v28  ;;  %v7474_v28 = vpack.c.bf16 %v1503_v27, %v1502_v26  ;;  %v2691_v27 = vld [vmem:[#allocation13 + $0x50] sm:$0xff] }
 0x279   :  { %v6629_v31 = vpop.eup %6628 }
 0x27a   :  { %4274 = vmatmul.mubr.f32.vlgmr.msra.gmra.mrb[14].mxu0 %v6629_v31 }
 0x27b   :  { %5679 = vmatpush3.bf16.msra.mxu0 %v7037_v11  ;;  %4308 = vmatprep.mubr.msk.f32.mxu0 %vm6847_vm0, %v6848_v1 }
 0x27c   :  { %5680 = vmatprep.subr.bf16.mxu0 %v6846_v0 }
 0x27f   :  { %5682 = vmatpush3.bf16.msra.mxu0 %v7047_v14 }
 0x280   :  { %5683 = vmatprep.subr.bf16.mxu0 %v6846_v0 }
 0x283   :  { %5685 = vmatpush3.bf16.msra.mxu0 %v7059_v19 }
 0x284   :  { %5686 = vmatprep.subr.bf16.mxu0 %v6846_v0 }
 0x287   :  { %5688 = vmatpush3.bf16.msra.mxu0 %v7072_v24 }
 0x288   :  { %5689 = vmatprep.subr.bf16.mxu0 %v6846_v0 }
 0x28b   :  { %5691 = vmatpush3.bf16.msra.mxu0 %v7086_v29 }
 0x28c   :  { %5692 = vmatprep.subr.bf16.mxu0 %v6846_v0 }
 0x28f   :  { %5694 = vmatpush3.bf16.msra.mxu0 %v7100_v33 }
 0x290   :  { %5695 = vmatprep.subr.bf16.mxu0 %v6846_v0 }
 0x293   :  { %5697 = vmatpush3.bf16.msra.mxu0 %v7115_v36 }
 0x294   :  { %5698 = vmatprep.subr.bf16.mxu0 %v6846_v0 }
 0x297   :  { %5700 = vmatpush3.bf16.msra.mxu0 %v7127_v39 }
 0x298   :  { %5701 = vmatprep.subr.bf16.mxu0 %v6846_v0 }
 0x29a   :  { %4309 = vmatmul.mubr.f32.vlgmr.msra.gmra.mrb[16].mxu0 %v6629_v31  ;;  %v1505_v31 = vld [vmem:[#allocation10 + $0x78] sm:$0xff] }
 0x29b   :  { %5703 = vmatpush3.bf16.msra.mxu0 %v7140_v43  ;;  %4343 = vmatprep.mubr.msk.f32.mxu0 %vm6847_vm0, %v6848_v1 }
 0x29c   :  { %5704 = vmatprep.subr.bf16.mxu0 %v6846_v0 }
 0x29f   :  { %5706 = vmatpush3.bf16.msra.mxu0 %v7143_v45 }
 0x2a0   :  { %5707 = vmatprep.subr.bf16.mxu0 %v6846_v0 }
 0x2a3   :  { %5709 = vmatpush3.bf16.msra.mxu0 %v7147_v48 }
 0x2a4   :  { %5710 = vmatprep.subr.bf16.mxu0 %v6846_v0 }
 0x2a7   :  { %5712 = vmatpush3.bf16.msra.mxu0 %v7151_v51 }
 0x2a8   :  { %5713 = vmatprep.subr.bf16.mxu0 %v6846_v0 }
 0x2ab   :  { %5715 = vmatpush3.bf16.msra.mxu0 %v7155_v54 }
 0x2ac   :  { %5716 = vmatprep.subr.bf16.mxu0 %v6846_v0 }
 0x2af   :  { %5718 = vmatpush3.bf16.msra.mxu0 %v7160_v57 }
 0x2b0   :  { %5719 = vmatprep.subr.bf16.mxu0 %v6846_v0 }
 0x2b3   :  { %5721 = vmatpush3.bf16.msra.mxu0 %v7164_v61 }
 0x2b4   :  { %5722 = vmatprep.subr.bf16.mxu0 %v6846_v0 }
 0x2b7   :  { %5724 = vmatpush3.bf16.msra.mxu0 %v7167_v63 }
 0x2b8   :  { %5749 = vmatprep.subr.bf16.mxu0 %v6846_v0 }
 0x36d   :  { %v682_v32 = vpop.f32.mrb[16].mxu0 }
 0x36e   :  { %v686_v34 = vadd.f32 %v682_v32, %v7177_v9  ;;  %v4310_v35 = vpop.f32.mrb[17].mxu0  ;;  %v7478_v32 = vpack.c.bf16 %v1505_v31, %v1504_v30  ;;  %v2693_v31 = vld [vmem:[#allocation13 + $0x60] sm:$0xff] }
 0x36f   :  { %v1517_v35 = vld [vmem:[#allocation12 + $0x58] sm:$0xff] }
 0x370   :  { %6630 = vtanh.f32 %v686_v34  ;;  %v1516_v34 = vld [vmem:[#allocation12 + $0x50] sm:$0xff] }
 0x37a   :  { %v6631_v37 = vpop.eup %6630 }
 0x37b   :  { %4344 = vmatmul.mubr.f32.vlgmr.msra.gmra.mrb[18].mxu0 %v6631_v37  ;;  %4379 = vmatmul.mubr.f32.vlgmr.msra.gmra.mrb[0].mxu1 %v6631_v37  ;;  %v7502_v37 = vpack.c.bf16 %v1517_v35, %v1516_v34  ;;  %v2695_v35 = vld [vmem:[#allocation13 + $0x70] sm:$0xff] }
 0x37c   :  { %5751 = vmatpush3.bf16.msra.mxu0 %v7140_v43  ;;  %5775 = vmatpush3.bf16.msra.mxu1 %v7037_v11 }
 0x37d   :  { %5752 = vmatprep.subr.bf16.mxu0 %v6846_v0  ;;  %5776 = vmatprep.subr.bf16.mxu1 %v6846_v0 }
 0x37e   :  { %4413 = vmatprep.mubr.msk.f32.mxu0 %vm6847_vm0, %v6848_v1  ;;  %4448 = vmatprep.mubr.msk.f32.mxu1 %vm6847_vm0, %v6848_v1 }
 0x380   :  { %5754 = vmatpush3.bf16.msra.mxu0 %v7143_v45  ;;  %5778 = vmatpush3.bf16.msra.mxu1 %v7047_v14 }
 0x381   :  { %5755 = vmatprep.subr.bf16.mxu0 %v6846_v0  ;;  %5779 = vmatprep.subr.bf16.mxu1 %v6846_v0 }
 0x384   :  { %5757 = vmatpush3.bf16.msra.mxu0 %v7147_v48  ;;  %5781 = vmatpush3.bf16.msra.mxu1 %v7059_v19 }
 0x385   :  { %5758 = vmatprep.subr.bf16.mxu0 %v6846_v0  ;;  %5782 = vmatprep.subr.bf16.mxu1 %v6846_v0 }
 0x388   :  { %5760 = vmatpush3.bf16.msra.mxu0 %v7151_v51  ;;  %5784 = vmatpush3.bf16.msra.mxu1 %v7072_v24 }
 0x389   :  { %5761 = vmatprep.subr.bf16.mxu0 %v6846_v0  ;;  %5785 = vmatprep.subr.bf16.mxu1 %v6846_v0 }
 0x38c   :  { %5763 = vmatpush3.bf16.msra.mxu0 %v7155_v54  ;;  %5787 = vmatpush3.bf16.msra.mxu1 %v7086_v29 }
 0x38d   :  { %5764 = vmatprep.subr.bf16.mxu0 %v6846_v0  ;;  %5788 = vmatprep.subr.bf16.mxu1 %v6846_v0 }
 0x390   :  { %5766 = vmatpush3.bf16.msra.mxu0 %v7160_v57  ;;  %5790 = vmatpush3.bf16.msra.mxu1 %v7100_v33 }
 0x391   :  { %5767 = vmatprep.subr.bf16.mxu0 %v6846_v0  ;;  %5791 = vmatprep.subr.bf16.mxu1 %v6846_v0 }
 0x394   :  { %5769 = vmatpush3.bf16.msra.mxu0 %v7164_v61  ;;  %5793 = vmatpush3.bf16.msra.mxu1 %v7115_v36 }
 0x395   :  { %5770 = vmatprep.subr.bf16.mxu0 %v6846_v0  ;;  %5794 = vmatprep.subr.bf16.mxu1 %v6846_v0 }
 0x398   :  { %5772 = vmatpush3.bf16.msra.mxu0 %v7167_v63  ;;  %5796 = vmatpush3.bf16.msra.mxu1 %v7127_v39 }
 0x399   :  { %5797 = vmatprep.subr.bf16.mxu0 %v6846_v0  ;;  %5821 = vmatprep.subr.bf16.mxu1 %v6846_v0 }
 0x44e   :  { %v828_v38 = vpop.f32.mrb[0].mxu1 }
 0x44f   :  { %v832_v40 = vadd.f32 %v828_v38, %v7175_v7  ;;  %v4380_v41 = vpop.f32.mrb[1].mxu1  ;;  %v1493_v7 = vld [vmem:[#allocation10 + $0x18] sm:$0xff]  ;;  %v1518_v38 = vld [vmem:[#allocation12 + $0x60] sm:$0xff] }
 0x450   :  { %v7452_v9 = vpack.c.bf16 %v1493_v7, %v1492_v6 }
 0x451   :  { %6632 = vtanh.f32 %v832_v40  ;;  %v1519_v40 = vld [vmem:[#allocation12 + $0x68] sm:$0xff] }
 0x452   :  { %v7506_v41 = vpack.c.bf16 %v1519_v40, %v1518_v38  ;;  %v7819_v40 = vld [vmem:[%s8015_s9] ss:$0 sm:$0xff] }
 0x45b   :  { %v6633_v42 = vpop.eup %6632 }
 0x45c   :  { %4414 = vmatmul.mubr.f32.vlgmr.msra.gmra.mrb[20].mxu0 %v6633_v42  ;;  %4449 = vmatmul.mubr.f32.vlgmr.msra.gmra.mrb[2].mxu1 %v6633_v42  ;;  %v1520_v42 = vld [vmem:[#allocation12 + $0x70] sm:$0xff] }
 0x45d   :  { %5799 = vmatpush3.bf16.msra.mxu0 %v7140_v43  ;;  %5823 = vmatpush3.bf16.msra.mxu1 %v7037_v11 }
 0x45e   :  { %5800 = vmatprep.subr.bf16.mxu0 %v6846_v0  ;;  %5824 = vmatprep.subr.bf16.mxu1 %v6846_v0 }
 0x45f   :  { %4483 = vmatprep.mubr.msk.f32.mxu0 %vm6847_vm0, %v6848_v1  ;;  %4518 = vmatprep.mubr.msk.f32.mxu1 %vm6847_vm0, %v6848_v1 }
 0x461   :  { %5802 = vmatpush3.bf16.msra.mxu0 %v7143_v45  ;;  %5826 = vmatpush3.bf16.msra.mxu1 %v7047_v14 }
 0x462   :  { %5803 = vmatprep.subr.bf16.mxu0 %v6846_v0  ;;  %5827 = vmatprep.subr.bf16.mxu1 %v6846_v0 }
 0x465   :  { %5805 = vmatpush3.bf16.msra.mxu0 %v7147_v48  ;;  %5829 = vmatpush3.bf16.msra.mxu1 %v7059_v19 }
 0x466   :  { %5806 = vmatprep.subr.bf16.mxu0 %v6846_v0  ;;  %5830 = vmatprep.subr.bf16.mxu1 %v6846_v0 }
 0x469   :  { %5808 = vmatpush3.bf16.msra.mxu0 %v7151_v51  ;;  %5832 = vmatpush3.bf16.msra.mxu1 %v7072_v24 }
 0x46a   :  { %5809 = vmatprep.subr.bf16.mxu0 %v6846_v0  ;;  %5833 = vmatprep.subr.bf16.mxu1 %v6846_v0 }
 0x46d   :  { %5811 = vmatpush3.bf16.msra.mxu0 %v7155_v54  ;;  %5835 = vmatpush3.bf16.msra.mxu1 %v7086_v29 }
 0x46e   :  { %5812 = vmatprep.subr.bf16.mxu0 %v6846_v0  ;;  %5836 = vmatprep.subr.bf16.mxu1 %v6846_v0 }
 0x471   :  { %5814 = vmatpush3.bf16.msra.mxu0 %v7160_v57  ;;  %5838 = vmatpush3.bf16.msra.mxu1 %v7100_v33 }
 0x472   :  { %5815 = vmatprep.subr.bf16.mxu0 %v6846_v0  ;;  %5839 = vmatprep.subr.bf16.mxu1 %v6846_v0 }
 0x475   :  { %5817 = vmatpush3.bf16.msra.mxu0 %v7164_v61  ;;  %5841 = vmatpush3.bf16.msra.mxu1 %v7115_v36 }
 0x476   :  { %5818 = vmatprep.subr.bf16.mxu0 %v6846_v0  ;;  %5842 = vmatprep.subr.bf16.mxu1 %v6846_v0 }
 0x479   :  { %5820 = vmatpush3.bf16.msra.mxu0 %v7167_v63  ;;  %5844 = vmatpush3.bf16.msra.mxu1 %v7127_v39 }
 0x47a   :  { %5845 = vmatprep.subr.bf16.mxu0 %v6846_v0  ;;  %5869 = vmatprep.subr.bf16.mxu1 %v6846_v0 }
 0x52f   :  { %v974_v44 = vpop.f32.mrb[2].mxu1 }
 0x530   :  { %v978_v46 = vadd.f32 %v974_v44, %v7181_v15  ;;  %v4450_v47 = vpop.f32.mrb[3].mxu1  ;;  %v1496_v15 = vld [vmem:[#allocation10 + $0x30] sm:$0xff]  ;;  %v1521_v44 = vld [vmem:[#allocation12 + $0x78] sm:$0xff] }
 0x531   :  { %v7517_v47 = vld [vmem:[%s8012_s6] ss:$0 sm:$0xff] }
 0x532   :  { %6634 = vtanh.f32 %v978_v46  ;;  %v7509_v46 = vpack.c.bf16 %v1521_v44, %v1520_v42 }
 0x53c   :  { %v6635_v49 = vpop.eup %6634 }
 0x53d   :  { %4484 = vmatmul.mubr.f32.vlgmr.msra.gmra.mrb[22].mxu0 %v6635_v49  ;;  %4519 = vmatmul.mubr.f32.vlgmr.msra.gmra.mrb[4].mxu1 %v6635_v49 }
 0x53e   :  { %5847 = vmatpush3.bf16.msra.mxu0 %v7140_v43  ;;  %5871 = vmatpush3.bf16.msra.mxu1 %v7037_v11 }
 0x53f   :  { %5848 = vmatprep.subr.bf16.mxu0 %v6846_v0  ;;  %5872 = vmatprep.subr.bf16.mxu1 %v6846_v0 }
 0x540   :  { %4553 = vmatprep.mubr.msk.f32.mxu0 %vm6847_vm0, %v6848_v1  ;;  %4588 = vmatprep.mubr.msk.f32.mxu1 %vm6847_vm0, %v6848_v1 }
 0x542   :  { %5850 = vmatpush3.bf16.msra.mxu0 %v7143_v45  ;;  %5874 = vmatpush3.bf16.msra.mxu1 %v7047_v14 }
 0x543   :  { %5851 = vmatprep.subr.bf16.mxu0 %v6846_v0  ;;  %5875 = vmatprep.subr.bf16.mxu1 %v6846_v0 }
 0x546   :  { %5853 = vmatpush3.bf16.msra.mxu0 %v7147_v48  ;;  %5877 = vmatpush3.bf16.msra.mxu1 %v7059_v19 }
 0x547   :  { %5854 = vmatprep.subr.bf16.mxu0 %v6846_v0  ;;  %5878 = vmatprep.subr.bf16.mxu1 %v6846_v0 }
 0x54a   :  { %5856 = vmatpush3.bf16.msra.mxu0 %v7151_v51  ;;  %5880 = vmatpush3.bf16.msra.mxu1 %v7072_v24 }
 0x54b   :  { %5857 = vmatprep.subr.bf16.mxu0 %v6846_v0  ;;  %5881 = vmatprep.subr.bf16.mxu1 %v6846_v0 }
 0x54e   :  { %5859 = vmatpush3.bf16.msra.mxu0 %v7155_v54  ;;  %5883 = vmatpush3.bf16.msra.mxu1 %v7086_v29 }
 0x54f   :  { %5860 = vmatprep.subr.bf16.mxu0 %v6846_v0  ;;  %5884 = vmatprep.subr.bf16.mxu1 %v6846_v0 }
 0x552   :  { %5862 = vmatpush3.bf16.msra.mxu0 %v7160_v57  ;;  %5886 = vmatpush3.bf16.msra.mxu1 %v7100_v33 }
 0x553   :  { %5863 = vmatprep.subr.bf16.mxu0 %v6846_v0  ;;  %5887 = vmatprep.subr.bf16.mxu1 %v6846_v0 }
 0x556   :  { %5865 = vmatpush3.bf16.msra.mxu0 %v7164_v61  ;;  %5889 = vmatpush3.bf16.msra.mxu1 %v7115_v36 }
 0x557   :  { %5866 = vmatprep.subr.bf16.mxu0 %v6846_v0  ;;  %5890 = vmatprep.subr.bf16.mxu1 %v6846_v0 }
 0x55a   :  { %5868 = vmatpush3.bf16.msra.mxu0 %v7167_v63  ;;  %5892 = vmatpush3.bf16.msra.mxu1 %v7127_v39 }
 0x55b   :  { %5893 = vmatprep.subr.bf16.mxu0 %v6846_v0  ;;  %5917 = vmatprep.subr.bf16.mxu1 %v6846_v0 }
 0x610   :  { %v1120_v50 = vpop.f32.mrb[4].mxu1 }
 0x611   :  { %v1124_v52 = vadd.f32 %v1120_v50, %v7179_v12  ;;  %v4520_v53 = vpop.f32.mrb[5].mxu1  ;;  %v1495_v12 = vld [vmem:[#allocation10 + $0x28] sm:$0xff] }
 0x612   :  { %v7458_v13 = vpack.c.bf16 %v1495_v12, %v1494_v10  ;;  %v2683_v10 = vld [vmem:[#allocation13 + $0x10] sm:$0xff]  ;;  %v2684_v12 = vld [vmem:[#allocation13 + $0x18] sm:$0xff] }
 0x613   :  { %6636 = vtanh.f32 %v1124_v52 }
 0x61d   :  { %v6637_v55 = vpop.eup %6636 }
 0x61e   :  { %4554 = vmatmul.mubr.f32.vlgmr.msra.gmra.mrb[24].mxu0 %v6637_v55  ;;  %4589 = vmatmul.mubr.f32.vlgmr.msra.gmra.mrb[6].mxu1 %v6637_v55 }
 0x61f   :  { %5895 = vmatpush3.bf16.msra.mxu0 %v7140_v43  ;;  %5919 = vmatpush3.bf16.msra.mxu1 %v7037_v11 }
 0x620   :  { %5896 = vmatprep.subr.bf16.mxu0 %v6846_v0  ;;  %5920 = vmatprep.subr.bf16.mxu1 %v6846_v0 }
 0x621   :  { %4623 = vmatprep.mubr.msk.f32.mxu0 %vm6847_vm0, %v6848_v1  ;;  %4658 = vmatprep.mubr.msk.f32.mxu1 %vm6847_vm0, %v6848_v1 }
 0x623   :  { %5898 = vmatpush3.bf16.msra.mxu0 %v7143_v45  ;;  %5922 = vmatpush3.bf16.msra.mxu1 %v7047_v14 }
 0x624   :  { %5899 = vmatprep.subr.bf16.mxu0 %v6846_v0  ;;  %5923 = vmatprep.subr.bf16.mxu1 %v6846_v0 }
 0x627   :  { %5901 = vmatpush3.bf16.msra.mxu0 %v7147_v48  ;;  %5925 = vmatpush3.bf16.msra.mxu1 %v7059_v19 }
 0x628   :  { %5902 = vmatprep.subr.bf16.mxu0 %v6846_v0  ;;  %5926 = vmatprep.subr.bf16.mxu1 %v6846_v0 }
 0x62b   :  { %5904 = vmatpush3.bf16.msra.mxu0 %v7151_v51  ;;  %5928 = vmatpush3.bf16.msra.mxu1 %v7072_v24 }
 0x62c   :  { %5905 = vmatprep.subr.bf16.mxu0 %v6846_v0  ;;  %5929 = vmatprep.subr.bf16.mxu1 %v6846_v0 }
 0x62f   :  { %5907 = vmatpush3.bf16.msra.mxu0 %v7155_v54  ;;  %5931 = vmatpush3.bf16.msra.mxu1 %v7086_v29  ;;  %v1506_v29 = vld [vmem:[#allocation12] sm:$0xff] }
 0x630   :  { %5908 = vmatprep.subr.bf16.mxu0 %v6846_v0  ;;  %5932 = vmatprep.subr.bf16.mxu1 %v6846_v0 }
 0x633   :  { %5910 = vmatpush3.bf16.msra.mxu0 %v7160_v57  ;;  %5934 = vmatpush3.bf16.msra.mxu1 %v7100_v33  ;;  %v1507_v33 = vld [vmem:[#allocation12 + $0x8] sm:$0xff] }
 0x634   :  { %5911 = vmatprep.subr.bf16.mxu0 %v6846_v0  ;;  %5935 = vmatprep.subr.bf16.mxu1 %v6846_v0 }
 0x637   :  { %5913 = vmatpush3.bf16.msra.mxu0 %v7164_v61  ;;  %5937 = vmatpush3.bf16.msra.mxu1 %v7115_v36  ;;  %v7428_v36 = vpack.c.bf16 %v1507_v33, %v1506_v29 }
 0x638   :  { %5914 = vmatprep.subr.bf16.mxu0 %v6846_v0  ;;  %5938 = vmatprep.subr.bf16.mxu1 %v6846_v0 }
 0x63b   :  { %5916 = vmatpush3.bf16.msra.mxu0 %v7167_v63  ;;  %5940 = vmatpush3.bf16.msra.mxu1 %v7127_v39  ;;  %v1508_v39 = vld [vmem:[#allocation12 + $0x10] sm:$0xff] }
 0x63c   :  { %5941 = vmatprep.subr.bf16.mxu0 %v6846_v0  ;;  %5989 = vmatprep.subr.bf16.mxu1 %v6846_v0 }
 0x6f1   :  { %v1266_v11 = vpop.f32.mrb[6].mxu1 }
 0x6f2   :  { %v1270_v14 = vadd.f32 %v1266_v11, %v7185_v20  ;;  %v4590_v19 = vpop.f32.mrb[7].mxu1  ;;  %v1499_v20 = vld [vmem:[#allocation10 + $0x48] sm:$0xff] }
 0x6f3   :  { %v7466_v21 = vpack.c.bf16 %v1499_v20, %v1498_v18  ;;  %v2687_v20 = vld [vmem:[#allocation13 + $0x30] sm:$0xff] }
 0x6f4   :  { %6638 = vtanh.f32 %v1270_v14 }
 0x6fe   :  { %v6639_v24 = vpop.eup %6638 }
 0x6ff   :  { %4624 = vmatmul.mubr.f32.vlgmr.msra.gmra.mrb[26].mxu0 %v6639_v24  ;;  %4659 = vmatmul.mubr.f32.vlgmr.msra.gmra.mrb[8].mxu1 %v6639_v24 }
 0x700   :  { %5943 = vmatpush3.bf16.msra.mxu0 %v7140_v43  ;;  %4693 = vmatprep.mubr.msk.f32.mxu0 %vm6847_vm0, %v6848_v1  ;;  %v1509_v43 = vld [vmem:[#allocation12 + $0x18] sm:$0xff] }
 0x701   :  { %5944 = vmatprep.subr.bf16.mxu0 %v6846_v0  ;;  %4763 = vmatprep.mubr.msk.f32.mxu1 %vm6847_vm0, %v6848_v1 }
 0x702   :  { %5991 = vmatpush3.bf16.msra.mxu1 %v7428_v36 }
 0x703   :  { %5992 = vmatprep.subr.bf16.mxu1 %v6846_v0 }
 0x704   :  { %5946 = vmatpush3.bf16.msra.mxu0 %v7143_v45  ;;  %v7431_v45 = vpack.c.bf16 %v1509_v43, %v1508_v39 }
 0x705   :  { %5947 = vmatprep.subr.bf16.mxu0 %v6846_v0 }
 0x706   :  { %5994 = vmatpush3.bf16.msra.mxu1 %v7431_v45 }
 0x707   :  { %5995 = vmatprep.subr.bf16.mxu1 %v6846_v0 }
 0x708   :  { %5949 = vmatpush3.bf16.msra.mxu0 %v7147_v48  ;;  %v1510_v48 = vld [vmem:[#allocation12 + $0x20] sm:$0xff] }
 0x709   :  { %5950 = vmatprep.subr.bf16.mxu0 %v6846_v0 }
 0x70c   :  { %5952 = vmatpush3.bf16.msra.mxu0 %v7151_v51  ;;  %v1511_v51 = vld [vmem:[#allocation12 + $0x28] sm:$0xff] }
 0x70d   :  { %5953 = vmatprep.subr.bf16.mxu0 %v6846_v0 }
 0x710   :  { %5955 = vmatpush3.bf16.msra.mxu0 %v7155_v54  ;;  %v7435_v54 = vpack.c.bf16 %v1511_v51, %v1510_v48 }
 0x711   :  { %5956 = vmatprep.subr.bf16.mxu0 %v6846_v0 }
 0x712   :  { %5997 = vmatpush3.bf16.msra.mxu1 %v7435_v54 }
 0x713   :  { %5998 = vmatprep.subr.bf16.mxu1 %v6846_v0 }
 0x714   :  { %5958 = vmatpush3.bf16.msra.mxu0 %v7160_v57  ;;  %v1513_v57 = vld [vmem:[#allocation12 + $0x38] sm:$0xff] }
 0x715   :  { %5959 = vmatprep.subr.bf16.mxu0 %v6846_v0  ;;  %v7439_v58 = vpack.c.bf16 %v1513_v57, %v1512_v56 }
 0x717   :  { %6000 = vmatpush3.bf16.msra.mxu1 %v7439_v58 }
 0x718   :  { %5961 = vmatpush3.bf16.msra.mxu0 %v7164_v61  ;;  %v7443_v61 = vpack.c.bf16 %v1515_v60, %v1514_v59  ;;  %6001 = vmatprep.subr.bf16.mxu1 %v6846_v0 }
 0x719   :  { %5962 = vmatprep.subr.bf16.mxu0 %v6846_v0 }
 0x71b   :  { %6003 = vmatpush3.bf16.msra.mxu1 %v7443_v61 }
 0x71c   :  { %5964 = vmatpush3.bf16.msra.mxu0 %v7167_v63  ;;  %6004 = vmatprep.subr.bf16.mxu1 %v6846_v0 }
 0x71d   :  { %5965 = vmatprep.subr.bf16.mxu0 %v6846_v0 }
 0x71f   :  { %6006 = vmatpush3.bf16.msra.mxu1 %v7502_v37 }
 0x720   :  { %6007 = vmatprep.subr.bf16.mxu1 %v6846_v0 }
 0x723   :  { %6009 = vmatpush3.bf16.msra.mxu1 %v7506_v41 }
 0x724   :  { %6010 = vmatprep.subr.bf16.mxu1 %v6846_v0 }
 0x727   :  { %6012 = vmatpush3.bf16.msra.mxu1 %v7509_v46 }
 0x728   :  { %6037 = vmatprep.subr.bf16.mxu1 %v6846_v0 }
 0x7d2   :  { %v1412_v62 = vpop.f32.mrb[8].mxu1 }
 0x7d3   :  { %v1416_v63 = vadd.f32 %v1412_v62, %v7183_v17  ;;  %v4660_v2 = vpop.f32.mrb[9].mxu1  ;;  %v7462_v17 = vpack.c.bf16 %v1497_v16, %v1496_v15  ;;  %v7766_v15 = vpack.c.bf16 %v2684_v12, %v2683_v10  ;;  %v2685_v16 = vld [vmem:[#allocation13 + $0x20] sm:$0xff] }
 0x7d5   :  { %6640 = vtanh.f32 %v1416_v63 }
 0x7df   :  { %v6641_v8 = vpop.eup %6640 }
 0x7e0   :  { %4694 = vmatmul.mubr.f32.vlgmr.msra.gmra.mrb[28].mxu0 %v6641_v8 }
 0x7e1   :  { %5967 = vmatpush3.bf16.msra.mxu0 %v7449_v5  ;;  %4728 = vmatprep.mubr.msk.f32.mxu0 %vm6847_vm0, %v6848_v1 }
 0x7e2   :  { %5968 = vmatprep.subr.bf16.mxu0 %v6846_v0 }
 0x7e5   :  { %5970 = vmatpush3.bf16.msra.mxu0 %v7452_v9 }
 0x7e6   :  { %5971 = vmatprep.subr.bf16.mxu0 %v6846_v0 }
 0x7e9   :  { %5973 = vmatpush3.bf16.msra.mxu0 %v7458_v13 }
 0x7ea   :  { %5974 = vmatprep.subr.bf16.mxu0 %v6846_v0 }
 0x7ed   :  { %5976 = vmatpush3.bf16.msra.mxu0 %v7462_v17 }
 0x7ee   :  { %5977 = vmatprep.subr.bf16.mxu0 %v6846_v0 }
 0x7f1   :  { %5979 = vmatpush3.bf16.msra.mxu0 %v7466_v21 }
 0x7f2   :  { %5980 = vmatprep.subr.bf16.mxu0 %v6846_v0 }
 0x7f5   :  { %5982 = vmatpush3.bf16.msra.mxu0 %v7470_v25 }
 0x7f6   :  { %5983 = vmatprep.subr.bf16.mxu0 %v6846_v0 }
 0x7f9   :  { %5985 = vmatpush3.bf16.msra.mxu0 %v7474_v28 }
 0x7fa   :  { %5986 = vmatprep.subr.bf16.mxu0 %v6846_v0 }
 0x7fd   :  { %5988 = vmatpush3.bf16.msra.mxu0 %v7478_v32 }
 0x7fe   :  { %6013 = vmatprep.subr.bf16.mxu0 %v6846_v0 }
 0x800   :  { %4729 = vmatmul.mubr.f32.vlgmr.msra.gmra.mrb[10].mxu0 %v6848_v1 }
 0x801   :  { %6015 = vmatpush3.bf16.msra.mxu0 %v7449_v5  ;;  %4798 = vmatprep.mubr.msk.f32.mxu0 %vm6847_vm0, %v6848_v1 }
 0x802   :  { %6016 = vmatprep.subr.bf16.mxu0 %v6846_v0 }
 0x805   :  { %6018 = vmatpush3.bf16.msra.mxu0 %v7452_v9 }
 0x806   :  { %6019 = vmatprep.subr.bf16.mxu0 %v6846_v0 }
 0x809   :  { %6021 = vmatpush3.bf16.msra.mxu0 %v7458_v13 }
 0x80a   :  { %6022 = vmatprep.subr.bf16.mxu0 %v6846_v0 }
 0x80d   :  { %6024 = vmatpush3.bf16.msra.mxu0 %v7462_v17 }
 0x80e   :  { %6025 = vmatprep.subr.bf16.mxu0 %v6846_v0 }
 0x811   :  { %6027 = vmatpush3.bf16.msra.mxu0 %v7466_v21 }
 0x812   :  { %6028 = vmatprep.subr.bf16.mxu0 %v6846_v0 }
 0x815   :  { %6030 = vmatpush3.bf16.msra.mxu0 %v7470_v25 }
 0x816   :  { %6031 = vmatprep.subr.bf16.mxu0 %v6846_v0 }
 0x819   :  { %6033 = vmatpush3.bf16.msra.mxu0 %v7474_v28 }
 0x81a   :  { %6034 = vmatprep.subr.bf16.mxu0 %v6846_v0 }
 0x81d   :  { %6036 = vmatpush3.bf16.msra.mxu0 %v7478_v32 }
 0x81e   :  { %6061 = vmatprep.subr.bf16.mxu0 %v6846_v0 }
 0x8d3   :  { %v1596_v49 = vpop.f32.mrb[10].mxu0 }
 0x8d4   :  { %v6565_v50 = vadd.f32 %v7517_v47, %v1596_v49  ;;  %v4730_v52 = vpop.f32.mrb[11].mxu0 }
 0x8d6   :  { %6642 = vtanh.f32 %v6565_v50 }
 0x8e0   :  { %v6643_v53 = vpop.eup %6642 }
 0x8e1   :  { %4764 = vmatmul.mubr.f32.vlgmr.msra.gmra.mrb[10].mxu1 %v6643_v53  ;;  %4799 = vmatmul.mubr.f32.vlgmr.msra.gmra.mrb[14].mxu0 %v6643_v53 }
 0x8e2   :  { %6039 = vmatpush3.bf16.msra.mxu1 %v7428_v36  ;;  %6063 = vmatpush3.bf16.msra.mxu0 %v7449_v5 }
 0x8e3   :  { %6040 = vmatprep.subr.bf16.mxu1 %v6846_v0  ;;  %6064 = vmatprep.subr.bf16.mxu0 %v6846_v0 }
 0x8e4   :  { %4833 = vmatprep.mubr.msk.f32.mxu1 %vm6847_vm0, %v6848_v1  ;;  %4868 = vmatprep.mubr.msk.f32.mxu0 %vm6847_vm0, %v6848_v1 }
 0x8e6   :  { %6042 = vmatpush3.bf16.msra.mxu1 %v7431_v45  ;;  %6066 = vmatpush3.bf16.msra.mxu0 %v7452_v9 }
 0x8e7   :  { %6043 = vmatprep.subr.bf16.mxu1 %v6846_v0  ;;  %6067 = vmatprep.subr.bf16.mxu0 %v6846_v0 }
 0x8ea   :  { %6045 = vmatpush3.bf16.msra.mxu1 %v7435_v54  ;;  %6069 = vmatpush3.bf16.msra.mxu0 %v7458_v13 }
 0x8eb   :  { %6046 = vmatprep.subr.bf16.mxu1 %v6846_v0  ;;  %6070 = vmatprep.subr.bf16.mxu0 %v6846_v0 }
 0x8ee   :  { %6048 = vmatpush3.bf16.msra.mxu1 %v7439_v58  ;;  %6072 = vmatpush3.bf16.msra.mxu0 %v7462_v17 }
 0x8ef   :  { %6049 = vmatprep.subr.bf16.mxu1 %v6846_v0  ;;  %6073 = vmatprep.subr.bf16.mxu0 %v6846_v0 }
 0x8f2   :  { %6051 = vmatpush3.bf16.msra.mxu1 %v7443_v61  ;;  %6075 = vmatpush3.bf16.msra.mxu0 %v7466_v21 }
 0x8f3   :  { %6052 = vmatprep.subr.bf16.mxu1 %v6846_v0  ;;  %6076 = vmatprep.subr.bf16.mxu0 %v6846_v0 }
 0x8f6   :  { %6054 = vmatpush3.bf16.msra.mxu1 %v7502_v37  ;;  %6078 = vmatpush3.bf16.msra.mxu0 %v7470_v25 }
 0x8f7   :  { %6055 = vmatprep.subr.bf16.mxu1 %v6846_v0  ;;  %6079 = vmatprep.subr.bf16.mxu0 %v6846_v0 }
 0x8fa   :  { %6057 = vmatpush3.bf16.msra.mxu1 %v7506_v41  ;;  %6081 = vmatpush3.bf16.msra.mxu0 %v7474_v28 }
 0x8fb   :  { %6058 = vmatprep.subr.bf16.mxu1 %v6846_v0  ;;  %6082 = vmatprep.subr.bf16.mxu0 %v6846_v0 }
 0x8fe   :  { %6060 = vmatpush3.bf16.msra.mxu1 %v7509_v46  ;;  %6084 = vmatpush3.bf16.msra.mxu0 %v7478_v32 }
 0x8ff   :  { %6085 = vmatprep.subr.bf16.mxu1 %v6846_v0  ;;  %6109 = vmatprep.subr.bf16.mxu0 %v6846_v0 }
 0x9b4   :  { %v1740_v55 = vpop.f32.mrb[14].mxu0 }
 0x9b5   :  { %v6566_v11 = vadd.f32 %v7517_v47, %v1740_v55  ;;  %v4800_v14 = vpop.f32.mrb[15].mxu0 }
 0x9b7   :  { %6644 = vtanh.f32 %v6566_v11 }
 0x9c1   :  { %v6645_v19 = vpop.eup %6644 }
 0x9c2   :  { %4834 = vmatmul.mubr.f32.vlgmr.msra.gmra.mrb[12].mxu1 %v6645_v19  ;;  %4869 = vmatmul.mubr.f32.vlgmr.msra.gmra.mrb[18].mxu0 %v6645_v19 }
 0x9c3   :  { %6087 = vmatpush3.bf16.msra.mxu1 %v7428_v36  ;;  %6111 = vmatpush3.bf16.msra.mxu0 %v7449_v5 }
 0x9c4   :  { %6088 = vmatprep.subr.bf16.mxu1 %v6846_v0  ;;  %6112 = vmatprep.subr.bf16.mxu0 %v6846_v0 }
 0x9c5   :  { %4903 = vmatprep.mubr.msk.f32.mxu1 %vm6847_vm0, %v6848_v1  ;;  %4938 = vmatprep.mubr.msk.f32.mxu0 %vm6847_vm0, %v6848_v1 }
 0x9c7   :  { %6090 = vmatpush3.bf16.msra.mxu1 %v7431_v45  ;;  %6114 = vmatpush3.bf16.msra.mxu0 %v7452_v9 }
 0x9c8   :  { %6091 = vmatprep.subr.bf16.mxu1 %v6846_v0  ;;  %6115 = vmatprep.subr.bf16.mxu0 %v6846_v0 }
 0x9cb   :  { %6093 = vmatpush3.bf16.msra.mxu1 %v7435_v54  ;;  %6117 = vmatpush3.bf16.msra.mxu0 %v7458_v13 }
 0x9cc   :  { %6094 = vmatprep.subr.bf16.mxu1 %v6846_v0  ;;  %6118 = vmatprep.subr.bf16.mxu0 %v6846_v0 }
 0x9cf   :  { %6096 = vmatpush3.bf16.msra.mxu1 %v7439_v58  ;;  %6120 = vmatpush3.bf16.msra.mxu0 %v7462_v17 }
 0x9d0   :  { %6097 = vmatprep.subr.bf16.mxu1 %v6846_v0  ;;  %6121 = vmatprep.subr.bf16.mxu0 %v6846_v0 }
 0x9d3   :  { %6099 = vmatpush3.bf16.msra.mxu1 %v7443_v61  ;;  %6123 = vmatpush3.bf16.msra.mxu0 %v7466_v21 }
 0x9d4   :  { %6100 = vmatprep.subr.bf16.mxu1 %v6846_v0  ;;  %6124 = vmatprep.subr.bf16.mxu0 %v6846_v0 }
 0x9d7   :  { %6102 = vmatpush3.bf16.msra.mxu1 %v7502_v37  ;;  %6126 = vmatpush3.bf16.msra.mxu0 %v7470_v25 }
 0x9d8   :  { %6103 = vmatprep.subr.bf16.mxu1 %v6846_v0  ;;  %6127 = vmatprep.subr.bf16.mxu0 %v6846_v0 }
 0x9db   :  { %6105 = vmatpush3.bf16.msra.mxu1 %v7506_v41  ;;  %6129 = vmatpush3.bf16.msra.mxu0 %v7474_v28 }
 0x9dc   :  { %6106 = vmatprep.subr.bf16.mxu1 %v6846_v0  ;;  %6130 = vmatprep.subr.bf16.mxu0 %v6846_v0 }
 0x9df   :  { %6108 = vmatpush3.bf16.msra.mxu1 %v7509_v46  ;;  %6132 = vmatpush3.bf16.msra.mxu0 %v7478_v32 }
 0x9e0   :  { %6133 = vmatprep.subr.bf16.mxu1 %v6846_v0  ;;  %6157 = vmatprep.subr.bf16.mxu0 %v6846_v0 }
 0xa95   :  { %v1884_v24 = vpop.f32.mrb[18].mxu0 }
 0xa96   :  { %v6567_v29 = vadd.f32 %v7517_v47, %v1884_v24  ;;  %v4870_v33 = vpop.f32.mrb[19].mxu0 }
 0xa98   :  { %6646 = vtanh.f32 %v6567_v29 }
 0xaa2   :  { %v6647_v39 = vpop.eup %6646 }
 0xaa3   :  { %4904 = vmatmul.mubr.f32.vlgmr.msra.gmra.mrb[14].mxu1 %v6647_v39  ;;  %4939 = vmatmul.mubr.f32.vlgmr.msra.gmra.mrb[20].mxu0 %v6647_v39 }
 0xaa4   :  { %6135 = vmatpush3.bf16.msra.mxu1 %v7428_v36  ;;  %6159 = vmatpush3.bf16.msra.mxu0 %v7449_v5 }
 0xaa5   :  { %6136 = vmatprep.subr.bf16.mxu1 %v6846_v0  ;;  %6160 = vmatprep.subr.bf16.mxu0 %v6846_v0 }
 0xaa6   :  { %4973 = vmatprep.mubr.msk.f32.mxu1 %vm6847_vm0, %v6848_v1  ;;  %5008 = vmatprep.mubr.msk.f32.mxu0 %vm6847_vm0, %v6848_v1 }
 0xaa8   :  { %6138 = vmatpush3.bf16.msra.mxu1 %v7431_v45  ;;  %6162 = vmatpush3.bf16.msra.mxu0 %v7452_v9 }
 0xaa9   :  { %6139 = vmatprep.subr.bf16.mxu1 %v6846_v0  ;;  %6163 = vmatprep.subr.bf16.mxu0 %v6846_v0 }
 0xaac   :  { %6141 = vmatpush3.bf16.msra.mxu1 %v7435_v54  ;;  %6165 = vmatpush3.bf16.msra.mxu0 %v7458_v13 }
 0xaad   :  { %6142 = vmatprep.subr.bf16.mxu1 %v6846_v0  ;;  %6166 = vmatprep.subr.bf16.mxu0 %v6846_v0 }
 0xab0   :  { %6144 = vmatpush3.bf16.msra.mxu1 %v7439_v58  ;;  %6168 = vmatpush3.bf16.msra.mxu0 %v7462_v17 }
 0xab1   :  { %6145 = vmatprep.subr.bf16.mxu1 %v6846_v0  ;;  %6169 = vmatprep.subr.bf16.mxu0 %v6846_v0 }
 0xab4   :  { %6147 = vmatpush3.bf16.msra.mxu1 %v7443_v61  ;;  %6171 = vmatpush3.bf16.msra.mxu0 %v7466_v21 }
 0xab5   :  { %6148 = vmatprep.subr.bf16.mxu1 %v6846_v0  ;;  %6172 = vmatprep.subr.bf16.mxu0 %v6846_v0 }
 0xab8   :  { %6150 = vmatpush3.bf16.msra.mxu1 %v7502_v37  ;;  %6174 = vmatpush3.bf16.msra.mxu0 %v7470_v25 }
 0xab9   :  { %6151 = vmatprep.subr.bf16.mxu1 %v6846_v0  ;;  %6175 = vmatprep.subr.bf16.mxu0 %v6846_v0 }
 0xabc   :  { %6153 = vmatpush3.bf16.msra.mxu1 %v7506_v41  ;;  %6177 = vmatpush3.bf16.msra.mxu0 %v7474_v28 }
 0xabd   :  { %6154 = vmatprep.subr.bf16.mxu1 %v6846_v0  ;;  %6178 = vmatprep.subr.bf16.mxu0 %v6846_v0 }
 0xac0   :  { %6156 = vmatpush3.bf16.msra.mxu1 %v7509_v46  ;;  %6180 = vmatpush3.bf16.msra.mxu0 %v7478_v32 }
 0xac1   :  { %6181 = vmatprep.subr.bf16.mxu1 %v6846_v0  ;;  %6205 = vmatprep.subr.bf16.mxu0 %v6846_v0 }
 0xb76   :  { %v2028_v43 = vpop.f32.mrb[20].mxu0 }
 0xb77   :  { %v6568_v48 = vadd.f32 %v7517_v47, %v2028_v43  ;;  %v4940_v51 = vpop.f32.mrb[21].mxu0 }
 0xb79   :  { %6648 = vtanh.f32 %v6568_v48 }
 0xb83   :  { %v6649_v56 = vpop.eup %6648 }
 0xb84   :  { %4974 = vmatmul.mubr.f32.vlgmr.msra.gmra.mrb[16].mxu1 %v6649_v56  ;;  %5009 = vmatmul.mubr.f32.vlgmr.msra.gmra.mrb[22].mxu0 %v6649_v56 }
 0xb85   :  { %6183 = vmatpush3.bf16.msra.mxu1 %v7428_v36  ;;  %6207 = vmatpush3.bf16.msra.mxu0 %v7449_v5 }
 0xb86   :  { %6184 = vmatprep.subr.bf16.mxu1 %v6846_v0  ;;  %6208 = vmatprep.subr.bf16.mxu0 %v6846_v0 }
 0xb87   :  { %5043 = vmatprep.mubr.msk.f32.mxu1 %vm6847_vm0, %v6848_v1  ;;  %5078 = vmatprep.mubr.msk.f32.mxu0 %vm6847_vm0, %v6848_v1 }
 0xb89   :  { %6186 = vmatpush3.bf16.msra.mxu1 %v7431_v45  ;;  %6210 = vmatpush3.bf16.msra.mxu0 %v7452_v9 }
 0xb8a   :  { %6187 = vmatprep.subr.bf16.mxu1 %v6846_v0  ;;  %6211 = vmatprep.subr.bf16.mxu0 %v6846_v0 }
 0xb8d   :  { %6189 = vmatpush3.bf16.msra.mxu1 %v7435_v54  ;;  %6213 = vmatpush3.bf16.msra.mxu0 %v7458_v13 }
 0xb8e   :  { %6190 = vmatprep.subr.bf16.mxu1 %v6846_v0  ;;  %6214 = vmatprep.subr.bf16.mxu0 %v6846_v0 }
 0xb91   :  { %6192 = vmatpush3.bf16.msra.mxu1 %v7439_v58  ;;  %6216 = vmatpush3.bf16.msra.mxu0 %v7462_v17 }
 0xb92   :  { %6193 = vmatprep.subr.bf16.mxu1 %v6846_v0  ;;  %6217 = vmatprep.subr.bf16.mxu0 %v6846_v0 }
 0xb95   :  { %6195 = vmatpush3.bf16.msra.mxu1 %v7443_v61  ;;  %6219 = vmatpush3.bf16.msra.mxu0 %v7466_v21 }
 0xb96   :  { %6196 = vmatprep.subr.bf16.mxu1 %v6846_v0  ;;  %6220 = vmatprep.subr.bf16.mxu0 %v6846_v0 }
 0xb99   :  { %6198 = vmatpush3.bf16.msra.mxu1 %v7502_v37  ;;  %6222 = vmatpush3.bf16.msra.mxu0 %v7470_v25 }
 0xb9a   :  { %6199 = vmatprep.subr.bf16.mxu1 %v6846_v0  ;;  %6223 = vmatprep.subr.bf16.mxu0 %v6846_v0 }
 0xb9d   :  { %6201 = vmatpush3.bf16.msra.mxu1 %v7506_v41  ;;  %6225 = vmatpush3.bf16.msra.mxu0 %v7474_v28 }
 0xb9e   :  { %6202 = vmatprep.subr.bf16.mxu1 %v6846_v0  ;;  %6226 = vmatprep.subr.bf16.mxu0 %v6846_v0 }
 0xba1   :  { %6204 = vmatpush3.bf16.msra.mxu1 %v7509_v46  ;;  %6228 = vmatpush3.bf16.msra.mxu0 %v7478_v32 }
 0xba2   :  { %6229 = vmatprep.subr.bf16.mxu1 %v6846_v0  ;;  %6253 = vmatprep.subr.bf16.mxu0 %v6846_v0 }
 0xc57   :  { %v2172_v57 = vpop.f32.mrb[22].mxu0 }
 0xc58   :  { %v6569_v59 = vadd.f32 %v7517_v47, %v2172_v57  ;;  %v5010_v60 = vpop.f32.mrb[23].mxu0 }
 0xc5a   :  { %6650 = vtanh.f32 %v6569_v59 }
 0xc64   :  { %v6651_v62 = vpop.eup %6650 }
 0xc65   :  { %5044 = vmatmul.mubr.f32.vlgmr.msra.gmra.mrb[18].mxu1 %v6651_v62  ;;  %5079 = vmatmul.mubr.f32.vlgmr.msra.gmra.mrb[24].mxu0 %v6651_v62  ;;  %v3282_v62 = vld [vmem:[%s8016_s10 + $0x8] sm:$0xff] }
 0xc66   :  { %6231 = vmatpush3.bf16.msra.mxu1 %v7428_v36  ;;  %6255 = vmatpush3.bf16.msra.mxu0 %v7449_v5 }
 0xc67   :  { %6232 = vmatprep.subr.bf16.mxu1 %v6846_v0  ;;  %6256 = vmatprep.subr.bf16.mxu0 %v6846_v0 }
 0xc68   :  { %5113 = vmatprep.mubr.msk.f32.mxu1 %vm6847_vm0, %v6848_v1  ;;  %5148 = vmatprep.mubr.msk.f32.mxu0 %vm6847_vm0, %v6848_v1 }
 0xc6a   :  { %6234 = vmatpush3.bf16.msra.mxu1 %v7431_v45  ;;  %6258 = vmatpush3.bf16.msra.mxu0 %v7452_v9 }
 0xc6b   :  { %6235 = vmatprep.subr.bf16.mxu1 %v6846_v0  ;;  %6259 = vmatprep.subr.bf16.mxu0 %v6846_v0 }
 0xc6e   :  { %6237 = vmatpush3.bf16.msra.mxu1 %v7435_v54  ;;  %6261 = vmatpush3.bf16.msra.mxu0 %v7458_v13 }
 0xc6f   :  { %6238 = vmatprep.subr.bf16.mxu1 %v6846_v0  ;;  %6262 = vmatprep.subr.bf16.mxu0 %v6846_v0 }
 0xc72   :  { %6240 = vmatpush3.bf16.msra.mxu1 %v7439_v58  ;;  %6264 = vmatpush3.bf16.msra.mxu0 %v7462_v17 }
 0xc73   :  { %6241 = vmatprep.subr.bf16.mxu1 %v6846_v0  ;;  %6265 = vmatprep.subr.bf16.mxu0 %v6846_v0 }
 0xc76   :  { %6243 = vmatpush3.bf16.msra.mxu1 %v7443_v61  ;;  %6267 = vmatpush3.bf16.msra.mxu0 %v7466_v21 }
 0xc77   :  { %6244 = vmatprep.subr.bf16.mxu1 %v6846_v0  ;;  %6268 = vmatprep.subr.bf16.mxu0 %v6846_v0 }
 0xc7a   :  { %6246 = vmatpush3.bf16.msra.mxu1 %v7502_v37  ;;  %6270 = vmatpush3.bf16.msra.mxu0 %v7470_v25 }
 0xc7b   :  { %6247 = vmatprep.subr.bf16.mxu1 %v6846_v0  ;;  %6271 = vmatprep.subr.bf16.mxu0 %v6846_v0 }
 0xc7e   :  { %6249 = vmatpush3.bf16.msra.mxu1 %v7506_v41  ;;  %6273 = vmatpush3.bf16.msra.mxu0 %v7474_v28 }
 0xc7f   :  { %6250 = vmatprep.subr.bf16.mxu1 %v6846_v0  ;;  %6274 = vmatprep.subr.bf16.mxu0 %v6846_v0 }
 0xc82   :  { %6252 = vmatpush3.bf16.msra.mxu1 %v7509_v46  ;;  %6276 = vmatpush3.bf16.msra.mxu0 %v7478_v32 }
 0xc83   :  { %6277 = vmatprep.subr.bf16.mxu1 %v6846_v0  ;;  %6301 = vmatprep.subr.bf16.mxu0 %v6846_v0 }
 0xd38   :  { %v2316_v63 = vpop.f32.mrb[24].mxu0 }
 0xd39   :  { %v6570_v2 = vadd.f32 %v7517_v47, %v2316_v63  ;;  %v5080_v3 = vpop.f32.mrb[25].mxu0  ;;  %v3283_v63 = vld [vmem:[%s8016_s10 + $0x10] sm:$0xff] }
 0xd3a   :  { %v3284_v3 = vld [vmem:[%s8016_s10 + $0x18] sm:$0xff] }
 0xd3b   :  { %6652 = vtanh.f32 %v6570_v2 }
 0xd45   :  { %v6653_v4 = vpop.eup %6652 }
 0xd46   :  { %5114 = vmatmul.mubr.f32.vlgmr.msra.gmra.mrb[20].mxu1 %v6653_v4  ;;  %5149 = vmatmul.mubr.f32.vlgmr.msra.gmra.mrb[26].mxu0 %v6653_v4  ;;  %v6545_v4 = vpack.c.bf16 %v3284_v3, %v3283_v63 }
 0xd47   :  { %6279 = vmatpush3.bf16.msra.mxu1 %v7428_v36  ;;  %6303 = vmatpush3.bf16.msra.mxu0 %v7449_v5 }
 0xd48   :  { %6280 = vmatprep.subr.bf16.mxu1 %v6846_v0  ;;  %6304 = vmatprep.subr.bf16.mxu0 %v6846_v0 }
 0xd49   :  { %5183 = vmatprep.mubr.msk.f32.mxu1 %vm6847_vm0, %v6848_v1  ;;  %5218 = vmatprep.mubr.msk.f32.mxu0 %vm6847_vm0, %v6848_v1 }
 0xd4b   :  { %6282 = vmatpush3.bf16.msra.mxu1 %v7431_v45  ;;  %6306 = vmatpush3.bf16.msra.mxu0 %v7452_v9 }
 0xd4c   :  { %6283 = vmatprep.subr.bf16.mxu1 %v6846_v0  ;;  %6307 = vmatprep.subr.bf16.mxu0 %v6846_v0 }
 0xd4f   :  { %6285 = vmatpush3.bf16.msra.mxu1 %v7435_v54  ;;  %6309 = vmatpush3.bf16.msra.mxu0 %v7458_v13 }
 0xd50   :  { %6286 = vmatprep.subr.bf16.mxu1 %v6846_v0  ;;  %6310 = vmatprep.subr.bf16.mxu0 %v6846_v0 }
 0xd53   :  { %6288 = vmatpush3.bf16.msra.mxu1 %v7439_v58  ;;  %6312 = vmatpush3.bf16.msra.mxu0 %v7462_v17  ;;  %v2686_v17 = vld [vmem:[#allocation13 + $0x28] sm:$0xff] }
 0xd54   :  { %6289 = vmatprep.subr.bf16.mxu1 %v6846_v0  ;;  %6313 = vmatprep.subr.bf16.mxu0 %v6846_v0  ;;  %v7772_v18 = vpack.c.bf16 %v2686_v17, %v2685_v16  ;;  %v3292_v16 = vld [vmem:[%s8016_s10 + $0x58] sm:$0xff] }
 0xd57   :  { %6291 = vmatpush3.bf16.msra.mxu1 %v7443_v61  ;;  %6315 = vmatpush3.bf16.msra.mxu0 %v7466_v21  ;;  %v2688_v21 = vld [vmem:[#allocation13 + $0x38] sm:$0xff] }
 0xd58   :  { %6292 = vmatprep.subr.bf16.mxu1 %v6846_v0  ;;  %6316 = vmatprep.subr.bf16.mxu0 %v6846_v0  ;;  %v7776_v22 = vpack.c.bf16 %v2688_v21, %v2687_v20  ;;  %v3294_v20 = vld [vmem:[%s8016_s10 + $0x68] sm:$0xff] }
 0xd5b   :  { %6294 = vmatpush3.bf16.msra.mxu1 %v7502_v37  ;;  %6318 = vmatpush3.bf16.msra.mxu0 %v7470_v25  ;;  %v2690_v25 = vld [vmem:[#allocation13 + $0x48] sm:$0xff] }
 0xd5c   :  { %6295 = vmatprep.subr.bf16.mxu1 %v6846_v0  ;;  %6319 = vmatprep.subr.bf16.mxu0 %v6846_v0  ;;  %v7780_v26 = vpack.c.bf16 %v2690_v25, %v2689_v23  ;;  %v3296_v23 = vld [vmem:[%s8016_s10 + $0x78] sm:$0xff] }
 0xd5f   :  { %6297 = vmatpush3.bf16.msra.mxu1 %v7506_v41  ;;  %6321 = vmatpush3.bf16.msra.mxu0 %v7474_v28  ;;  %v2692_v28 = vld [vmem:[#allocation13 + $0x58] sm:$0xff] }
 0xd60   :  { %6298 = vmatprep.subr.bf16.mxu1 %v6846_v0  ;;  %6322 = vmatprep.subr.bf16.mxu0 %v6846_v0  ;;  %v7784_v30 = vpack.c.bf16 %v2692_v28, %v2691_v27 }
 0xd63   :  { %6300 = vmatpush3.bf16.msra.mxu1 %v7509_v46  ;;  %6324 = vmatpush3.bf16.msra.mxu0 %v7478_v32  ;;  %v2694_v32 = vld [vmem:[#allocation13 + $0x68] sm:$0xff] }
 0xd64   :  { %6325 = vmatprep.subr.bf16.mxu1 %v6846_v0  ;;  %6541 = vmatprep.subr.bf16.mxu0 %v6846_v0  ;;  %v7788_v34 = vpack.c.bf16 %v2694_v32, %v2693_v31  ;;  %v3406_v31 = vld [vmem:[%s8017_s11] ss:$0 sm:$0xff] }
 0xe19   :  { %v2460_v5 = vpop.f32.mrb[26].mxu0 }
 0xe1a   :  { %v6571_v6 = vadd.f32 %v7517_v47, %v2460_v5  ;;  %v5150_v7 = vpop.f32.mrb[27].mxu0  ;;  %v3285_v5 = vld [vmem:[%s8016_s10 + $0x20] sm:$0xff] }
 0xe1c   :  { %6654 = vtanh.f32 %v6571_v6  ;;  %v3286_v6 = vld [vmem:[%s8016_s10 + $0x28] sm:$0xff] }
 0xe1d   :  { %v6548_v7 = vpack.c.bf16 %v3286_v6, %v3285_v5 }
 0xe26   :  { %v6655_v8 = vpop.eup %6654 }
 0xe27   :  { %5184 = vmatmul.mubr.f32.vlgmr.msra.gmra.mrb[22].mxu1 %v6655_v8  ;;  %5219 = vmatmul.mubr.f32.vlgmr.msra.gmra.mrb[28].mxu0 %v6655_v8  ;;  %v3287_v8 = vld [vmem:[%s8016_s10 + $0x30] sm:$0xff] }
 0xe28   :  { %6327 = vmatpush3.bf16.msra.mxu1 %v7428_v36  ;;  %5253 = vmatprep.mubr.msk.f32.mxu1 %vm6847_vm0, %v6848_v1 }
 0xe29   :  { %6328 = vmatprep.subr.bf16.mxu1 %v6846_v0  ;;  %5568 = vmatprep.mubr.msk.f32.mxu0 %vm6847_vm0, %v6848_v1 }
 0xe2c   :  { %6330 = vmatpush3.bf16.msra.mxu1 %v7431_v45 }
 0xe2d   :  { %6331 = vmatprep.subr.bf16.mxu1 %v6846_v0 }
 0xe30   :  { %6333 = vmatpush3.bf16.msra.mxu1 %v7435_v54 }
 0xe31   :  { %6334 = vmatprep.subr.bf16.mxu1 %v6846_v0 }
 0xe34   :  { %6336 = vmatpush3.bf16.msra.mxu1 %v7439_v58  ;;  %v2681_v58 = vld [vmem:[#allocation13] sm:$0xff] }
 0xe35   :  { %6337 = vmatprep.subr.bf16.mxu1 %v6846_v0 }
 0xe38   :  { %6339 = vmatpush3.bf16.msra.mxu1 %v7443_v61  ;;  %v2682_v61 = vld [vmem:[#allocation13 + $0x8] sm:$0xff] }
 0xe39   :  { %6340 = vmatprep.subr.bf16.mxu1 %v6846_v0  ;;  %v7763_v9 = vpack.c.bf16 %v2682_v61, %v2681_v58  ;;  %v3290_v58 = vld [vmem:[%s8016_s10 + $0x48] sm:$0xff] }
 0xe3c   :  { %6342 = vmatpush3.bf16.msra.mxu1 %v7502_v37  ;;  %v2696_v37 = vld [vmem:[#allocation13 + $0x78] sm:$0xff] }
 0xe3d   :  { %6343 = vmatprep.subr.bf16.mxu1 %v6846_v0  ;;  %v7792_v38 = vpack.c.bf16 %v2696_v37, %v2695_v35 }
 0xe40   :  { %6345 = vmatpush3.bf16.msra.mxu1 %v7506_v41 }
 0xe41   :  { %6346 = vmatprep.subr.bf16.mxu1 %v6846_v0 }
 0xe44   :  { %6348 = vmatpush3.bf16.msra.mxu1 %v7509_v46 }
 0xe45   :  { %6349 = vmatprep.subr.bf16.mxu1 %v6846_v0 }
 0xefa   :  { %v2604_v36 = vpop.f32.mrb[28].mxu0 }
 0xefb   :  { %v6572_v45 = vadd.f32 %v7517_v47, %v2604_v36  ;;  %v5220_v54 = vpop.f32.mrb[29].mxu0  ;;  %v3288_v36 = vld [vmem:[%s8016_s10 + $0x38] sm:$0xff] }
 0xefc   :  { %v3289_v54 = vld [vmem:[%s8016_s10 + $0x40] sm:$0xff] }
 0xefd   :  { %6656 = vtanh.f32 %v6572_v45  ;;  %v6551_v45 = vpack.c.bf16 %v3288_v36, %v3287_v8  ;;  %v6554_v61 = vpack.c.bf16 %v3290_v58, %v3289_v54 }
 0xf07   :  { %v6657_v13 = vpop.eup %6656 }
 0xf08   :  { %5254 = vmatmul.mubr.f32.vlgmr.msra.gmra.mrb[24].mxu1 %v6657_v13 }
 0xf09   :  { %6351 = vmatpush3.bf16.msra.mxu1 %v7763_v9  ;;  %5288 = vmatprep.mubr.msk.f32.mxu1 %vm6847_vm0, %v6848_v1 }
 0xf0a   :  { %6352 = vmatprep.subr.bf16.mxu1 %v6846_v0 }
 0xf0d   :  { %6354 = vmatpush3.bf16.msra.mxu1 %v7766_v15 }
 0xf0e   :  { %6355 = vmatprep.subr.bf16.mxu1 %v6846_v0 }
 0xf11   :  { %6357 = vmatpush3.bf16.msra.mxu1 %v7772_v18 }
 0xf12   :  { %6358 = vmatprep.subr.bf16.mxu1 %v6846_v0 }
 0xf15   :  { %6360 = vmatpush3.bf16.msra.mxu1 %v7776_v22 }
 0xf16   :  { %6361 = vmatprep.subr.bf16.mxu1 %v6846_v0 }
 0xf19   :  { %6363 = vmatpush3.bf16.msra.mxu1 %v7780_v26 }
 0xf1a   :  { %6364 = vmatprep.subr.bf16.mxu1 %v6846_v0 }
 0xf1d   :  { %6366 = vmatpush3.bf16.msra.mxu1 %v7784_v30 }
 0xf1e   :  { %6367 = vmatprep.subr.bf16.mxu1 %v6846_v0 }
 0xf21   :  { %6369 = vmatpush3.bf16.msra.mxu1 %v7788_v34 }
 0xf22   :  { %6370 = vmatprep.subr.bf16.mxu1 %v6846_v0 }
 0xf25   :  { %6372 = vmatpush3.bf16.msra.mxu1 %v7792_v38 }
 0xf26   :  { %6373 = vmatprep.subr.bf16.mxu1 %v6846_v0 }
 0xf28   :  { %5289 = vmatmul.mubr.f32.vlgmr.msra.gmra.mrb[10].mxu1 %v6848_v1 }
 0xf29   :  { %6375 = vmatpush3.bf16.msra.mxu1 %v7763_v9  ;;  %5323 = vmatprep.mubr.msk.f32.mxu1 %vm6847_vm0, %v6848_v1 }
 0xf2a   :  { %6376 = vmatprep.subr.bf16.mxu1 %v6846_v0 }
 0xf2d   :  { %6378 = vmatpush3.bf16.msra.mxu1 %v7766_v15 }
 0xf2e   :  { %6379 = vmatprep.subr.bf16.mxu1 %v6846_v0 }
 0xf31   :  { %6381 = vmatpush3.bf16.msra.mxu1 %v7772_v18 }
 0xf32   :  { %6382 = vmatprep.subr.bf16.mxu1 %v6846_v0 }
 0xf35   :  { %6384 = vmatpush3.bf16.msra.mxu1 %v7776_v22 }
 0xf36   :  { %6385 = vmatprep.subr.bf16.mxu1 %v6846_v0 }
 0xf39   :  { %6387 = vmatpush3.bf16.msra.mxu1 %v7780_v26 }
 0xf3a   :  { %6388 = vmatprep.subr.bf16.mxu1 %v6846_v0 }
 0xf3d   :  { %6390 = vmatpush3.bf16.msra.mxu1 %v7784_v30 }
 0xf3e   :  { %6391 = vmatprep.subr.bf16.mxu1 %v6846_v0 }
 0xf41   :  { %6393 = vmatpush3.bf16.msra.mxu1 %v7788_v34 }
 0xf42   :  { %6394 = vmatprep.subr.bf16.mxu1 %v6846_v0 }
 0xf45   :  { %6396 = vmatpush3.bf16.msra.mxu1 %v7792_v38 }
 0xf46   :  { %6397 = vmatprep.subr.bf16.mxu1 %v6846_v0 }
 0xffb   :  { %v2764_v41 = vpop.f32.mrb[10].mxu1 }
 0xffc   :  { %v6573_v42 = vadd.f32 %v7819_v40, %v2764_v41  ;;  %v5290_v44 = vpop.f32.mrb[11].mxu1 }
 0xffe   :  { %6658 = vtanh.f32 %v6573_v42 }
0x1008   :  { %v6659_v46 = vpop.eup %6658 }
0x1009   :  { %5324 = vmatmul.mubr.f32.vlgmr.msra.gmra.mrb[12].mxu1 %v6659_v46 }
0x100a   :  { %6399 = vmatpush3.bf16.msra.mxu1 %v7763_v9  ;;  %5358 = vmatprep.mubr.msk.f32.mxu1 %vm6847_vm0, %v6848_v1 }
0x100b   :  { %6400 = vmatprep.subr.bf16.mxu1 %v6846_v0 }
0x100e   :  { %6402 = vmatpush3.bf16.msra.mxu1 %v7766_v15 }
0x100f   :  { %6403 = vmatprep.subr.bf16.mxu1 %v6846_v0 }
0x1012   :  { %6405 = vmatpush3.bf16.msra.mxu1 %v7772_v18 }
0x1013   :  { %6406 = vmatprep.subr.bf16.mxu1 %v6846_v0 }
0x1016   :  { %6408 = vmatpush3.bf16.msra.mxu1 %v7776_v22 }
0x1017   :  { %6409 = vmatprep.subr.bf16.mxu1 %v6846_v0 }
0x101a   :  { %6411 = vmatpush3.bf16.msra.mxu1 %v7780_v26 }
0x101b   :  { %6412 = vmatprep.subr.bf16.mxu1 %v6846_v0 }
0x101e   :  { %6414 = vmatpush3.bf16.msra.mxu1 %v7784_v30 }
0x101f   :  { %6415 = vmatprep.subr.bf16.mxu1 %v6846_v0 }
0x1022   :  { %6417 = vmatpush3.bf16.msra.mxu1 %v7788_v34 }
0x1023   :  { %6418 = vmatprep.subr.bf16.mxu1 %v6846_v0 }
0x1026   :  { %6420 = vmatpush3.bf16.msra.mxu1 %v7792_v38 }
0x1027   :  { %6421 = vmatprep.subr.bf16.mxu1 %v6846_v0 }
0x10dc   :  { %v2837_v47 = vpop.f32.mrb[12].mxu1 }
0x10dd   :  { %v6574_v49 = vadd.f32 %v7819_v40, %v2837_v47  ;;  %v5325_v50 = vpop.f32.mrb[13].mxu1 }
0x10df   :  { %6660 = vtanh.f32 %v6574_v49 }
0x10e9   :  { %v6661_v52 = vpop.eup %6660 }
0x10ea   :  { %5359 = vmatmul.mubr.f32.vlgmr.msra.gmra.mrb[14].mxu1 %v6661_v52 }
0x10eb   :  { %6423 = vmatpush3.bf16.msra.mxu1 %v7763_v9  ;;  %5393 = vmatprep.mubr.msk.f32.mxu1 %vm6847_vm0, %v6848_v1 }
0x10ec   :  { %6424 = vmatprep.subr.bf16.mxu1 %v6846_v0 }
0x10ef   :  { %6426 = vmatpush3.bf16.msra.mxu1 %v7766_v15 }
0x10f0   :  { %6427 = vmatprep.subr.bf16.mxu1 %v6846_v0 }
0x10f3   :  { %6429 = vmatpush3.bf16.msra.mxu1 %v7772_v18 }
0x10f4   :  { %6430 = vmatprep.subr.bf16.mxu1 %v6846_v0 }
0x10f7   :  { %6432 = vmatpush3.bf16.msra.mxu1 %v7776_v22 }
0x10f8   :  { %6433 = vmatprep.subr.bf16.mxu1 %v6846_v0 }
0x10fb   :  { %6435 = vmatpush3.bf16.msra.mxu1 %v7780_v26 }
0x10fc   :  { %6436 = vmatprep.subr.bf16.mxu1 %v6846_v0 }
0x10ff   :  { %6438 = vmatpush3.bf16.msra.mxu1 %v7784_v30 }
0x1100   :  { %6439 = vmatprep.subr.bf16.mxu1 %v6846_v0 }
0x1103   :  { %6441 = vmatpush3.bf16.msra.mxu1 %v7788_v34 }
0x1104   :  { %6442 = vmatprep.subr.bf16.mxu1 %v6846_v0 }
0x1107   :  { %6444 = vmatpush3.bf16.msra.mxu1 %v7792_v38 }
0x1108   :  { %6445 = vmatprep.subr.bf16.mxu1 %v6846_v0 }
0x11bd   :  { %v2910_v53 = vpop.f32.mrb[14].mxu1 }
0x11be   :  { %v6575_v55 = vadd.f32 %v7819_v40, %v2910_v53  ;;  %v5360_v11 = vpop.f32.mrb[15].mxu1 }
0x11c0   :  { %6662 = vtanh.f32 %v6575_v55 }
0x11ca   :  { %v6663_v14 = vpop.eup %6662 }
0x11cb   :  { %5394 = vmatmul.mubr.f32.vlgmr.msra.gmra.mrb[16].mxu1 %v6663_v14 }
0x11cc   :  { %6447 = vmatpush3.bf16.msra.mxu1 %v7763_v9  ;;  %5428 = vmatprep.mubr.msk.f32.mxu1 %vm6847_vm0, %v6848_v1 }
0x11cd   :  { %6448 = vmatprep.subr.bf16.mxu1 %v6846_v0 }
0x11d0   :  { %6450 = vmatpush3.bf16.msra.mxu1 %v7766_v15 }
0x11d1   :  { %6451 = vmatprep.subr.bf16.mxu1 %v6846_v0 }
0x11d4   :  { %6453 = vmatpush3.bf16.msra.mxu1 %v7772_v18 }
0x11d5   :  { %6454 = vmatprep.subr.bf16.mxu1 %v6846_v0 }
0x11d8   :  { %6456 = vmatpush3.bf16.msra.mxu1 %v7776_v22 }
0x11d9   :  { %6457 = vmatprep.subr.bf16.mxu1 %v6846_v0 }
0x11dc   :  { %6459 = vmatpush3.bf16.msra.mxu1 %v7780_v26 }
0x11dd   :  { %6460 = vmatprep.subr.bf16.mxu1 %v6846_v0 }
0x11e0   :  { %6462 = vmatpush3.bf16.msra.mxu1 %v7784_v30 }
0x11e1   :  { %6463 = vmatprep.subr.bf16.mxu1 %v6846_v0 }
0x11e4   :  { %6465 = vmatpush3.bf16.msra.mxu1 %v7788_v34 }
0x11e5   :  { %6466 = vmatprep.subr.bf16.mxu1 %v6846_v0 }
0x11e8   :  { %6468 = vmatpush3.bf16.msra.mxu1 %v7792_v38 }
0x11e9   :  { %6469 = vmatprep.subr.bf16.mxu1 %v6846_v0 }
0x129e   :  { %v2983_v19 = vpop.f32.mrb[16].mxu1 }
0x129f   :  { %v6576_v24 = vadd.f32 %v7819_v40, %v2983_v19  ;;  %v5395_v29 = vpop.f32.mrb[17].mxu1 }
0x12a1   :  { %6664 = vtanh.f32 %v6576_v24 }
0x12ab   :  { %v6665_v33 = vpop.eup %6664 }
0x12ac   :  { %5429 = vmatmul.mubr.f32.vlgmr.msra.gmra.mrb[18].mxu1 %v6665_v33 }
0x12ad   :  { %6471 = vmatpush3.bf16.msra.mxu1 %v7763_v9  ;;  %5463 = vmatprep.mubr.msk.f32.mxu1 %vm6847_vm0, %v6848_v1 }
0x12ae   :  { %6472 = vmatprep.subr.bf16.mxu1 %v6846_v0 }
0x12b1   :  { %6474 = vmatpush3.bf16.msra.mxu1 %v7766_v15 }
0x12b2   :  { %6475 = vmatprep.subr.bf16.mxu1 %v6846_v0 }
0x12b5   :  { %6477 = vmatpush3.bf16.msra.mxu1 %v7772_v18 }
0x12b6   :  { %6478 = vmatprep.subr.bf16.mxu1 %v6846_v0 }
0x12b9   :  { %6480 = vmatpush3.bf16.msra.mxu1 %v7776_v22 }
0x12ba   :  { %6481 = vmatprep.subr.bf16.mxu1 %v6846_v0 }
0x12bd   :  { %6483 = vmatpush3.bf16.msra.mxu1 %v7780_v26 }
0x12be   :  { %6484 = vmatprep.subr.bf16.mxu1 %v6846_v0 }
0x12c1   :  { %6486 = vmatpush3.bf16.msra.mxu1 %v7784_v30 }
0x12c2   :  { %6487 = vmatprep.subr.bf16.mxu1 %v6846_v0 }
0x12c5   :  { %6489 = vmatpush3.bf16.msra.mxu1 %v7788_v34 }
0x12c6   :  { %6490 = vmatprep.subr.bf16.mxu1 %v6846_v0 }
0x12c9   :  { %6492 = vmatpush3.bf16.msra.mxu1 %v7792_v38 }
0x12ca   :  { %6493 = vmatprep.subr.bf16.mxu1 %v6846_v0 }
0x137f   :  { %v3056_v39 = vpop.f32.mrb[18].mxu1 }
0x1380   :  { %v6577_v43 = vadd.f32 %v7819_v40, %v3056_v39  ;;  %v5430_v48 = vpop.f32.mrb[19].mxu1 }
0x1382   :  { %6666 = vtanh.f32 %v6577_v43 }
0x138c   :  { %v6667_v51 = vpop.eup %6666 }
0x138d   :  { %5464 = vmatmul.mubr.f32.vlgmr.msra.gmra.mrb[20].mxu1 %v6667_v51 }
0x138e   :  { %6495 = vmatpush3.bf16.msra.mxu1 %v7763_v9  ;;  %5498 = vmatprep.mubr.msk.f32.mxu1 %vm6847_vm0, %v6848_v1 }
0x138f   :  { %6496 = vmatprep.subr.bf16.mxu1 %v6846_v0 }
0x1392   :  { %6498 = vmatpush3.bf16.msra.mxu1 %v7766_v15 }
0x1393   :  { %6499 = vmatprep.subr.bf16.mxu1 %v6846_v0 }
0x1396   :  { %6501 = vmatpush3.bf16.msra.mxu1 %v7772_v18 }
0x1397   :  { %6502 = vmatprep.subr.bf16.mxu1 %v6846_v0 }
0x139a   :  { %6504 = vmatpush3.bf16.msra.mxu1 %v7776_v22 }
0x139b   :  { %6505 = vmatprep.subr.bf16.mxu1 %v6846_v0 }
0x139e   :  { %6507 = vmatpush3.bf16.msra.mxu1 %v7780_v26 }
0x139f   :  { %6508 = vmatprep.subr.bf16.mxu1 %v6846_v0 }
0x13a2   :  { %6510 = vmatpush3.bf16.msra.mxu1 %v7784_v30 }
0x13a3   :  { %6511 = vmatprep.subr.bf16.mxu1 %v6846_v0 }
0x13a6   :  { %6513 = vmatpush3.bf16.msra.mxu1 %v7788_v34 }
0x13a7   :  { %6514 = vmatprep.subr.bf16.mxu1 %v6846_v0 }
0x13aa   :  { %6516 = vmatpush3.bf16.msra.mxu1 %v7792_v38 }
0x13ab   :  { %6517 = vmatprep.subr.bf16.mxu1 %v6846_v0 }
0x1460   :  { %v3129_v56 = vpop.f32.mrb[20].mxu1 }
0x1461   :  { %v6578_v57 = vadd.f32 %v7819_v40, %v3129_v56  ;;  %v5465_v59 = vpop.f32.mrb[21].mxu1 }
0x1463   :  { %6668 = vtanh.f32 %v6578_v57 }
0x146d   :  { %v6669_v60 = vpop.eup %6668 }
0x146e   :  { %5499 = vmatmul.mubr.f32.vlgmr.msra.gmra.mrb[22].mxu1 %v6669_v60 }
0x146f   :  { %6519 = vmatpush3.bf16.msra.mxu1 %v7763_v9  ;;  %5533 = vmatprep.mubr.msk.f32.mxu1 %vm6847_vm0, %v6848_v1  ;;  %v3281_v1 = vld [vmem:[%s8016_s10] sm:$0xff] }
0x1470   :  { %6520 = vmatprep.subr.bf16.mxu1 %v6846_v0  ;;  %v6542_v2 = vpack.c.bf16 %v3282_v62, %v3281_v1 }
0x1472   :  { %6543 = vmatpush3.bf16.msra.mxu0 %v6542_v2 }
0x1473   :  { %6522 = vmatpush3.bf16.msra.mxu1 %v7766_v15  ;;  %6544 = vmatprep.subr.bf16.mxu0 %v6846_v0  ;;  %v3291_v15 = vld [vmem:[%s8016_s10 + $0x50] sm:$0xff] }
0x1474   :  { %6523 = vmatprep.subr.bf16.mxu1 %v6846_v0  ;;  %v6557_v17 = vpack.c.bf16 %v3292_v16, %v3291_v15 }
0x1476   :  { %6546 = vmatpush3.bf16.msra.mxu0 %v6545_v4 }
0x1477   :  { %6525 = vmatpush3.bf16.msra.mxu1 %v7772_v18  ;;  %6547 = vmatprep.subr.bf16.mxu0 %v6846_v0  ;;  %v3293_v18 = vld [vmem:[%s8016_s10 + $0x60] sm:$0xff] }
0x1478   :  { %6526 = vmatprep.subr.bf16.mxu1 %v6846_v0  ;;  %v6560_v21 = vpack.c.bf16 %v3294_v20, %v3293_v18 }
0x147a   :  { %6549 = vmatpush3.bf16.msra.mxu0 %v6548_v7 }
0x147b   :  { %6528 = vmatpush3.bf16.msra.mxu1 %v7776_v22  ;;  %6550 = vmatprep.subr.bf16.mxu0 %v6846_v0  ;;  %v3295_v22 = vld [vmem:[%s8016_s10 + $0x70] sm:$0xff]  ;;  %s6806_s10 = scalar_lea.vmem %s3383_s18, 128 }
0x147c   :  { %6529 = vmatprep.subr.bf16.mxu1 %v6846_v0  ;;  %v6563_v25 = vpack.c.bf16 %v3296_v23, %v3295_v22  ;;  %p6807_p6 = scmp.ne.s32.totalorder %s3383_s18, %s6806_s10  ;;  %p6812_p8 = scmp.lt.s32.totalorder %s6806_s10, %s6806_s10 }
0x147e   :  { %6552 = vmatpush3.bf16.msra.mxu0 %v6551_v45  ;;  %p6813_p9 = por %p6812_p8, %p6811_p7 }
0x147f   :  { %6531 = vmatpush3.bf16.msra.mxu1 %v7780_v26  ;;  %6553 = vmatprep.subr.bf16.mxu0 %v6846_v0 }
0x1480   :  { %6532 = vmatprep.subr.bf16.mxu1 %v6846_v0  ;;  %p6814_p10 = pnand %p6813_p9, %p6807_p6 }
0x1482   :  { %6555 = vmatpush3.bf16.msra.mxu0 %v6554_v61 }
0x1483   :  { %6534 = vmatpush3.bf16.msra.mxu1 %v7784_v30  ;;  %6556 = vmatprep.subr.bf16.mxu0 %v6846_v0 }
0x1484   :  { %6535 = vmatprep.subr.bf16.mxu1 %v6846_v0 }
0x1486   :  { %6558 = vmatpush3.bf16.msra.mxu0 %v6557_v17 }
0x1487   :  { %6537 = vmatpush3.bf16.msra.mxu1 %v7788_v34  ;;  %6559 = vmatprep.subr.bf16.mxu0 %v6846_v0 }
0x1488   :  { %6538 = vmatprep.subr.bf16.mxu1 %v6846_v0 }
0x148a   :  { %6561 = vmatpush3.bf16.msra.mxu0 %v6560_v21 }
0x148b   :  { %6540 = vmatpush3.bf16.msra.mxu1 %v7792_v38  ;;  %6562 = vmatprep.subr.bf16.mxu0 %v6846_v0 }
0x148e   :  { %6564 = vmatpush3.bf16.msra.mxu0 %v6563_v25 }
0x1541   :  { %v3202_v9 = vpop.f32.mrb[22].mxu1 }
0x1542   :  { %v6579_v10 = vadd.f32 %v7819_v40, %v3202_v9  ;;  %v5500_v12 = vpop.f32.mrb[23].mxu1 }
0x1544   :  { %6670 = vtanh.f32 %v6579_v10 }
0x154e   :  { %v6671_v13 = vpop.eup %6670 }
0x154f   :  { %5534 = vmatmul.mubr.f32.vlgmr.msra.gmra.mrb[24].mxu1 %v6671_v13 }
0x1622   :  { %v3275_v26 = vpop.f32.mrb[24].mxu1 }
0x1623   :  { %v6580_v27 = vadd.f32 %v7819_v40, %v3275_v26  ;;  %v5535_v28 = vpop.f32.mrb[25].mxu1 }
0x1625   :  { %6672 = vtanh.f32 %v6580_v27 }
0x162f   :  { %v6673_v30 = vpop.eup %6672 }
0x1630   :  { %5569 = vmatmul.mubr.f32.vlgmr.msra.gmra.mrb[30].mxu0 %v6673_v30 }
0x1703   :  { %v3370_v32 = vpop.f32.mrb[30].mxu0 }
0x1704   :  { %v3371_v34 = vadd.f32 %v3406_v31, %v3370_v32  ;;  %v5570_v35 = vpop.f32.mrb[31].mxu0 }
0x1706   :  { %3375 = vst.msk [vmem:[#allocation15] sm:$0xff] %vm3374_vm5, %v3371_v34 }
0x1707   :  { %6817 = shalt.err (!%p6814_p10)
}
0x1708   :  { %s6818_s19 = scalar_lea.hbm %s8018_s12, 128 }
0x1709   :  { %p6819_p11 = scmp.ne.s32.totalorder %s8018_s12, %s6818_s19  ;;  %p6822_p12 = scmp.lt.u32.totalorder %s6818_s19, %s8018_s12 }
0x170b   :  { %p6824_p13 = pnand %p6822_p12, %p6819_p11 }
0x170d   :  { %6827 = shalt.err (!%p6824_p13)
}
0x170e   :  { %3385 = dma.vmem_to_hbm [thread:$0]  %s3383_s18, 128, %s8018_s12, [#allocation6]  }
0x170f   :  { %6836 = dma.done.wait [#allocation6], 128  }
0x1710   :  { %6837 = vsyncadd [#allocation6], 4294967168 }
0x1711   :  { %3389 = vsyncpa [#allocation5], 1 }
0x1712   :  { %3390 = vsyncpa [#allocation8], 1 }
0x1713   :  { %3391 = vsyncpa [#allocation11], 1 }
0x1714   :  { %3392 = vsyncpa [#allocation14], 1 }
0x1715   :  { %3393 = vsyncpa [#allocation6], 1 }

</bundles_post_ra>
